<compile_context>
chip_gen: v7x
topology: tpu7x:2x2x1
jax: 0.10.0
libtpu: 0.0.40
codegen_flags: <defaults>
</compile_context>

<pallas_src>
import jax
import jax.numpy as jnp
import numpy as np
from jax import lax
from jax.experimental import pallas as pl
from jax.experimental.pallas import tpu as pltpu

jax.config.update("jax_default_matmul_precision", "float32")

# ----- model dimensions (small, consistent with Block(layer_id=0, ...)) -----
B, T, C = 2, 8, 32          # batch, sequence, n_embd
H, N = 2, 16                # n_head, head_size
A = H * N                   # dim_att (= n_embd here)
F = 2 * C                   # dim_ffn (= 64)
assert A == C               # needed by the (1,C)-row packing of decay/faaaa

LN_EPS = 1e-5               # nn.LayerNorm default
GN_EPS = 64e-5              # RWKV-v5 GroupNorm eps = 1e-5 * head_size_divisor**2 (divisor=8)
PREC = lax.Precision.HIGHEST


# ---------------------------------------------------------------------------
# in-kernel helpers
# ---------------------------------------------------------------------------
def _ln(x, w, b):
    mu = jnp.mean(x, axis=-1, keepdims=True)
    xc = x - mu
    var = jnp.mean(xc * xc, axis=-1, keepdims=True)
    return xc * lax.rsqrt(var + LN_EPS) * w + b


# ---------------------------------------------------------------------------
# the kernel: one full RWKV Block forward for a single batch element
# ---------------------------------------------------------------------------
def rwkv_block_kernel(
    # per-batch inputs
    x_ref,            # (T, C)
    shifts_ref,       # (2, C)  row 0 = att token-shift state, row 1 = ffn state
    wkv_ref,          # (H, N, N)
    # packed parameters (shared across the grid)
    vec_ref,          # (10, C) rows: ln0 w/b, ln1 w/b, ln2 w/b, lnx w/b, decay, faaaa
    watt_ref,         # (2C, 4A) = [mix⊙W ; (1-mix)⊙W] for W in [wr|wk|wv|wg]
    wffn_ref,         # (2C, F+C) same packing for [fwk|fwr]
    wout_ref,         # (A+F, C) rows 0:A = wo, rows A:A+F = fwv
    # outputs
    y_ref,            # (T, C)
    shifts_out_ref,   # (2, C)
    wkv_out_ref,      # (H, N, N)
):
    x = x_ref[...]                                   # (T, C)

    ln0_w = vec_ref[0:1, :]; ln0_b = vec_ref[1:2, :]
    ln1_w = vec_ref[2:3, :]; ln1_b = vec_ref[3:4, :]
    ln2_w = vec_ref[4:5, :]; ln2_b = vec_ref[5:6, :]
    lnx_w = vec_ref[6:7, :]; lnx_b = vec_ref[7:8, :]
    log_w = -jnp.exp(vec_ref[8:9, :])                # (1, A)  log of per-channel decay w
    u_row = vec_ref[9:10, :]                         # (1, A)  time_faaaa

    # masks / iotas built once and reused by both token shifts and both heads
    row0 = lax.broadcasted_iota(jnp.int32, (T, C), 0) == 0
    t_col = lax.broadcasted_iota(jnp.int32, (T, 1), 0).astype(jnp.float32)   # 0 .. T-1
    ti = lax.broadcasted_iota(jnp.int32, (T, T), 0)
    si = lax.broadcasted_iota(jnp.int32, (T, T), 1)
    causal = (si < ti).astype(jnp.float32)                            # strictly lower-tri

    # decay powers, hoisted over heads (EUP work done once, full A width)
    Tf = float(T)
    w_t_all = jnp.exp(log_w * t_col)                  # w^t          (T, A)
    w_it_all = jnp.exp(-log_w * (t_col + 1.0))        # w^-(t+1)     (T, A)
    w_rt_all = jnp.exp(log_w * (Tf - 1.0 - t_col))    # w^(T-1-t)    (T, A)
    wT_col = jnp.exp(jnp.transpose(log_w) * Tf)       # w^T          (A, 1)

    # layer_id == 0  ->  ln0
    x = _ln(x, ln0_w, ln0_b)

    # ------------------------- RWKV_TimeMix (att) -------------------------
    x1 = _ln(x, ln1_w, ln1_b)
    xx = jnp.where(row0, shifts_ref[0:1, :], pltpu.roll(x1, 1, 0))    # token shift

    # [r|k|v|g] = x1 @ (mix ⊙ W) + xx @ ((1-mix) ⊙ W)   (mix folded into watt)
    rkvg = (jnp.dot(x1, watt_ref[0:C, :], precision=PREC,
                    preferred_element_type=jnp.float32)
            + jnp.dot(xx, watt_ref[C:2 * C, :], precision=PREC,
                      preferred_element_type=jnp.float32))            # (T, 4A)
    gl = rkvg[:, 3 * A:4 * A]
    g = gl * jax.nn.sigmoid(gl)                                       # SiLU gate (T, A)

    att_out = jnp.zeros((T, C), jnp.float32)
    for h in range(H):
        lo, hi = h * N, (h + 1) * N
        rh = rkvg[:, lo:hi]                                           # (T, N)
        kh = rkvg[:, A + lo:A + hi]
        vh = rkvg[:, 2 * A + lo:2 * A + hi]
        uh = u_row[:, lo:hi]

        rw = rh * w_t_all[:, lo:hi]
        s0 = wkv_ref[h, :, :]                                         # (N, N)

        # parallel (chunked) WKV: diag(u) term + carried-state matmul + intra matmul
        a_tt = lax.dot_general(rw, kh * w_it_all[:, lo:hi], (((1,), (1,)), ((), ())),
                               precision=PREC,
                               preferred_element_type=jnp.float32) * causal   # (T, T)
        y_h = (jnp.sum(rh * uh * kh, axis=1, keepdims=True) * vh
               + jnp.dot(rw, s0, precision=PREC, preferred_element_type=jnp.float32)
               + jnp.dot(a_tt, vh, precision=PREC, preferred_element_type=jnp.float32))

        # state carried out of the chunk: s_T = w^T ⊙_rows s0 + (k ⊙ w^(T-1-t))^T @ v
        wkv_out_ref[h, :, :] = wT_col[lo:hi, :] * s0 + lax.dot_general(
            kh * w_rt_all[:, lo:hi], vh, (((0,), (0,)), ((), ())),
            precision=PREC, preferred_element_type=jnp.float32)

        # GroupNorm(n_head) over this head, SiLU gate, block-row of the output proj
        mu = jnp.mean(y_h, axis=-1, keepdims=True)
        var = jnp.mean((y_h - mu) ** 2, axis=-1, keepdims=True)
        y_n = (y_h - mu) * lax.rsqrt(var + GN_EPS) * lnx_w[:, lo:hi] + lnx_b[:, lo:hi]
        att_out = att_out + jnp.dot(y_n * g[:, lo:hi], wout_ref[lo:hi, :],
                                    precision=PREC,
                                    preferred_element_type=jnp.float32)

    x = x + att_out

    # ------------------------ RWKV_ChannelMix (ffn) ------------------------
    x2 = _ln(x, ln2_w, ln2_b)
    xxf = jnp.where(row0, shifts_ref[1:2, :], pltpu.roll(x2, 1, 0))
    kr = (jnp.dot(x2, wffn_ref[0:C, :], precision=PREC,
                  preferred_element_type=jnp.float32)
          + jnp.dot(xxf, wffn_ref[C:2 * C, :], precision=PREC,
                    preferred_element_type=jnp.float32))              # (T, F+C)
    kf = jnp.square(jnp.maximum(kr[:, 0:F], 0.0))                     # relu^2
    kv = jnp.dot(kf, wout_ref[A:A + F, :], precision=PREC,
                 preferred_element_type=jnp.float32)                  # (T, C)
    ffn_out = jax.nn.sigmoid(kr[:, F:F + C]) * kv

    y_ref[...] = x + ffn_out
    shifts_out_ref[0:1, :] = x1[T - 1:T, :]
    shifts_out_ref[1:2, :] = x2[T - 1:T, :]


# ---------------------------------------------------------------------------
# parameter packing (plain JAX, outside the kernel)
# ---------------------------------------------------------------------------
def _pack_params(p):
    vec = jnp.concatenate([
        p["ln0_w"], p["ln0_b"], p["ln1_w"], p["ln1_b"],
        p["ln2_w"], p["ln2_b"], p["lnx_w"], p["lnx_b"],
        p["decay"].reshape(1, A), p["faaaa"].reshape(1, A),
    ], axis=0).astype(jnp.float32)                                    # (10, C)

    def col(mix, w):   # fold the token-shift mix into the projection weights
        return mix.reshape(C, 1) * w

    watt = jnp.concatenate([
        jnp.concatenate([col(p["mix_r"], p["wr"]), col(p["mix_k"], p["wk"]),
                         col(p["mix_v"], p["wv"]), col(p["mix_g"], p["wg"])], axis=1),
        jnp.concatenate([col(1.0 - p["mix_r"], p["wr"]), col(1.0 - p["mix_k"], p["wk"]),
                         col(1.0 - p["mix_v"], p["wv"]), col(1.0 - p["mix_g"], p["wg"])],
                        axis=1),
    ], axis=0)                                                        # (2C, 4A)

    wffn = jnp.concatenate([
        jnp.concatenate([col(p["fmix_k"], p["fwk"]), col(p["fmix_r"], p["fwr"])], axis=1),
        jnp.concatenate([col(1.0 - p["fmix_k"], p["fwk"]),
                         col(1.0 - p["fmix_r"], p["fwr"])], axis=1),
    ], axis=0)                                                        # (2C, F+C)

    wout = jnp.concatenate([p["wo"], p["fwv"]], axis=0)               # (A+F, C)
    return vec, watt, wffn, wout


# ---------------------------------------------------------------------------
# wrapper
# ---------------------------------------------------------------------------
def _rwkv_block(x, att_shift, wkv_state, ffn_shift, params):
    vec, watt, wffn, wout = _pack_params(params)
    shifts = jnp.stack([att_shift, ffn_shift], axis=1)                # (B, 2, C)

    in_specs = [
        pl.BlockSpec((None, T, C), lambda b: (b, 0, 0)),              # x
        pl.BlockSpec((None, 2, C), lambda b: (b, 0, 0)),              # shift states
        pl.BlockSpec((None, H, N, N), lambda b: (b, 0, 0, 0)),        # wkv state
        pl.BlockSpec(vec.shape, lambda b: (0, 0)),                    # packed vectors
        pl.BlockSpec(watt.shape, lambda b: (0, 0)),                   # packed att weights
        pl.BlockSpec(wffn.shape, lambda b: (0, 0)),                   # packed ffn weights
        pl.BlockSpec(wout.shape, lambda b: (0, 0)),                   # wo | fwv
    ]
    out_shape = (
        jax.ShapeDtypeStruct((B, T, C), jnp.float32),
        jax.ShapeDtypeStruct((B, 2, C), jnp.float32),
        jax.ShapeDtypeStruct((B, H, N, N), jnp.float32),
    )
    out_specs = (
        pl.BlockSpec((None, T, C), lambda b: (b, 0, 0)),
        pl.BlockSpec((None, 2, C), lambda b: (b, 0, 0)),
        pl.BlockSpec((None, H, N, N), lambda b: (b, 0, 0, 0)),
    )

    y, shifts_out, wkv_out = pl.pallas_call(
        rwkv_block_kernel,
        out_shape=out_shape,
        grid=(B,),
        in_specs=in_specs,
        out_specs=out_specs,
        compiler_params=pltpu.CompilerParams(
            dimension_semantics=("parallel",)),      # v7x: one batch element per TC
    )(x, shifts, wkv_state, vec, watt, wffn, wout)

    return y, shifts_out[:, 0, :], wkv_out, shifts_out[:, 1, :]


rwkv_block = jax.jit(_rwkv_block)


# ---------------------------------------------------------------------------
# deterministic parameter init
# ---------------------------------------------------------------------------
def init_params(key):
    keys = jax.random.split(key, 16)

    def lin(k, fan_in, fan_out):
        return jax.random.normal(k, (fan_in, fan_out), jnp.float32) / np.sqrt(fan_in)

    return {
        "ln0_w": jnp.ones((1, C), jnp.float32), "ln0_b": jnp.zeros((1, C), jnp.float32),
        "ln1_w": jnp.ones((1, C), jnp.float32), "ln1_b": jnp.zeros((1, C), jnp.float32),
        "ln2_w": jnp.ones((1, C), jnp.float32), "ln2_b": jnp.zeros((1, C), jnp.float32),
        "mix_k": jax.random.uniform(keys[0], (1, C), jnp.float32),
        "mix_v": jax.random.uniform(keys[1], (1, C), jnp.float32),
        "mix_r": jax.random.uniform(keys[2], (1, C), jnp.float32),
        "mix_g": jax.random.uniform(keys[3], (1, C), jnp.float32),
        "decay": -5.0 + jax.random.uniform(keys[4], (H, N), jnp.float32),
        "faaaa": 0.05 * jax.random.normal(keys[5], (H, N), jnp.float32),
        "wr": lin(keys[6], C, A), "wk": lin(keys[7], C, A),
        "wv": lin(keys[8], C, A), "wg": lin(keys[9], C, A),
        "wo": lin(keys[10], A, C),
        "lnx_w": jnp.ones((1, A), jnp.float32), "lnx_b": jnp.zeros((1, A), jnp.float32),
        "fmix_k": jax.random.uniform(keys[11], (1, C), jnp.float32),
        "fmix_r": jax.random.uniform(keys[12], (1, C), jnp.float32),
        "fwk": lin(keys[13], C, F), "fwv": lin(keys[14], F, C), "fwr": lin(keys[15], C, C),
    }


# ---------------------------------------------------------------------------
# pure-JAX reference (serial recurrence), single batch element
# ---------------------------------------------------------------------------
def _ref_one(xb, a_shift, s0, f_shift, p):
    def ln(t, w, b):
        mu = t.mean(-1, keepdims=True)
        var = ((t - mu) ** 2).mean(-1, keepdims=True)
        return (t - mu) * lax.rsqrt(var + LN_EPS) * w + b

    def shift(t, prev):
        return jnp.concatenate([prev.reshape(1, -1), t[:-1]], axis=0)

    x = ln(xb, p["ln0_w"], p["ln0_b"])
    x1 = ln(x, p["ln1_w"], p["ln1_b"])
    xx = shift(x1, a_shift)
    xk = x1 * p["mix_k"] + xx * (1 - p["mix_k"])
    xv = x1 * p["mix_v"] + xx * (1 - p["mix_v"])
    xr = x1 * p["mix_r"] + xx * (1 - p["mix_r"])
    xg = x1 * p["mix_g"] + xx * (1 - p["mix_g"])
    r = xr @ p["wr"]; k = xk @ p["wk"]; v = xv @ p["wv"]
    g = jax.nn.silu(xg @ p["wg"])
    w = jnp.exp(-jnp.exp(p["decay"])); u = p["faaaa"]
    r3, k3, v3 = (a.reshape(T, H, N) for a in (r, k, v))
    s = s0
    ys = []
    for t in range(T):
        rt, kt, vt = r3[t], k3[t], v3[t]
        at = kt[:, :, None] * vt[:, None, :]
        ys.append(jnp.einsum("hi,hij->hj", rt, u[:, :, None] * at + s))
        s = at + w[:, :, None] * s
    y = jnp.stack(ys, 0)                                              # (T, H, N)
    mu = y.mean(-1, keepdims=True)
    var = ((y - mu) ** 2).mean(-1, keepdims=True)
    yn = ((y - mu) * lax.rsqrt(var + GN_EPS)).reshape(T, A) * p["lnx_w"] + p["lnx_b"]
    att_out = (yn * g) @ p["wo"]
    x = x + att_out

    x2 = ln(x, p["ln2_w"], p["ln2_b"])
    xxf = shift(x2, f_shift)
    xkf = x2 * p["fmix_k"] + xxf * (1 - p["fmix_k"])
    xrf = x2 * p["fmix_r"] + xxf * (1 - p["fmix_r"])
    kf = jnp.square(jnp.maximum(xkf @ p["fwk"], 0.0))
    ffn_out = jax.nn.sigmoid(xrf @ p["fwr"]) * (kf @ p["fwv"])
    return x + ffn_out, x1[-1], s, x2[-1]


if __name__ == "__main__":
    key = jax.random.PRNGKey(0)
    kx, ka, kw, kf, kp = jax.random.split(key, 5)
    x = jax.random.normal(kx, (B, T, C), jnp.float32)
    att_shift = jax.random.normal(ka, (B, C), jnp.float32)
    wkv_state = 0.1 * jax.random.normal(kw, (B, H, N, N), jnp.float32)
    ffn_shift = jax.random.normal(kf, (B, C), jnp.float32)
    params = init_params(kp)

    y, a_out, wkv_out, f_out = jax.block_until_ready(
        rwkv_block(x, att_shift, wkv_state, ffn_shift, params)
    )

    # reference check (pure JAX, serial recurrence)
    refs = [_ref_one(x[b], att_shift[b], wkv_state[b], ffn_shift[b], params)
            for b in range(B)]
    y_r = jnp.stack([r[0] for r in refs])
    a_r = jnp.stack([r[1] for r in refs])
    w_r = jnp.stack([r[2] for r in refs])
    f_r = jnp.stack([r[3] for r in refs])

    np.testing.assert_allclose(np.asarray(y), np.asarray(y_r), rtol=1e-3, atol=1e-3)
    np.testing.assert_allclose(np.asarray(a_out), np.asarray(a_r), rtol=1e-3, atol=1e-3)
    np.testing.assert_allclose(np.asarray(wkv_out), np.asarray(w_r), rtol=1e-3, atol=1e-3)
    np.testing.assert_allclose(np.asarray(f_out), np.asarray(f_r), rtol=1e-3, atol=1e-3)

    print("KERNEL_OK")
</pallas_src>

<mosaic_0001>
module attributes {stable_mosaic.version = 11 : i64} {
  func.func @rwkv_block_kernel(%arg0: i32, %arg1: memref<1x8x32xf32, #tpu.memory_space<vmem>>, %arg2: memref<1x2x32xf32, #tpu.memory_space<vmem>>, %arg3: memref<1x2x16x16xf32, #tpu.memory_space<vmem>>, %arg4: memref<10x32xf32, #tpu.memory_space<vmem>>, %arg5: memref<64x128xf32, #tpu.memory_space<vmem>>, %arg6: memref<64x96xf32, #tpu.memory_space<vmem>>, %arg7: memref<96x32xf32, #tpu.memory_space<vmem>>, %arg8: memref<1x8x32xf32, #tpu.memory_space<vmem>>, %arg9: memref<1x2x32xf32, #tpu.memory_space<vmem>>, %arg10: memref<1x2x16x16xf32, #tpu.memory_space<vmem>>) attributes {dimension_semantics = [#tpu.dimension_semantics<parallel>], iteration_bounds = array<i64: 2>, scalar_prefetch = 0 : i64, scratch_operands = 0 : i64, tpu.core_type = #tpu.core_type<tc>, window_params = [{transform_indices = @transform_0, window_bounds = array<i64: 1, 8, 32>}, {transform_indices = @transform_1, window_bounds = array<i64: 1, 2, 32>}, {transform_indices = @transform_2, window_bounds = array<i64: 1, 2, 16, 16>}, {pipeline_mode = #tpu.pipeline_mode<synchronous>, transform_indices = @transform_3, window_bounds = array<i64: 10, 32>}, {pipeline_mode = #tpu.pipeline_mode<synchronous>, transform_indices = @transform_4, window_bounds = array<i64: 64, 128>}, {pipeline_mode = #tpu.pipeline_mode<synchronous>, transform_indices = @transform_5, window_bounds = array<i64: 64, 96>}, {pipeline_mode = #tpu.pipeline_mode<synchronous>, transform_indices = @transform_6, window_bounds = array<i64: 96, 32>}, {transform_indices = @transform_7, window_bounds = array<i64: 1, 8, 32>}, {transform_indices = @transform_8, window_bounds = array<i64: 1, 2, 32>}, {transform_indices = @transform_9, window_bounds = array<i64: 1, 2, 16, 16>}]} {
    %c0 = arith.constant 0 : index
    %c0_0 = arith.constant 0 : index
    %c0_1 = arith.constant 0 : index
    %0 = vector.load %arg1[%c0, %c0_0, %c0_1] : memref<1x8x32xf32, #tpu.memory_space<vmem>>, vector<1x8x32xf32>
    %1 = vector.shape_cast %0 : vector<1x8x32xf32> to vector<8x32xf32>
    %c0_2 = arith.constant 0 : index
    %c0_3 = arith.constant 0 : index
    %2 = vector.load %arg4[%c0_2, %c0_3] : memref<10x32xf32, #tpu.memory_space<vmem>>, vector<1x32xf32>
    %c1 = arith.constant 1 : index
    %c0_4 = arith.constant 0 : index
    %3 = vector.load %arg4[%c1, %c0_4] : memref<10x32xf32, #tpu.memory_space<vmem>>, vector<1x32xf32>
    %c2 = arith.constant 2 : index
    %c0_5 = arith.constant 0 : index
    %4 = vector.load %arg4[%c2, %c0_5] : memref<10x32xf32, #tpu.memory_space<vmem>>, vector<1x32xf32>
    %c3 = arith.constant 3 : index
    %c0_6 = arith.constant 0 : index
    %5 = vector.load %arg4[%c3, %c0_6] : memref<10x32xf32, #tpu.memory_space<vmem>>, vector<1x32xf32>
    %c4 = arith.constant 4 : index
    %c0_7 = arith.constant 0 : index
    %6 = vector.load %arg4[%c4, %c0_7] : memref<10x32xf32, #tpu.memory_space<vmem>>, vector<1x32xf32>
    %c5 = arith.constant 5 : index
    %c0_8 = arith.constant 0 : index
    %7 = vector.load %arg4[%c5, %c0_8] : memref<10x32xf32, #tpu.memory_space<vmem>>, vector<1x32xf32>
    %c6 = arith.constant 6 : index
    %c0_9 = arith.constant 0 : index
    %8 = vector.load %arg4[%c6, %c0_9] : memref<10x32xf32, #tpu.memory_space<vmem>>, vector<1x32xf32>
    %c7 = arith.constant 7 : index
    %c0_10 = arith.constant 0 : index
    %9 = vector.load %arg4[%c7, %c0_10] : memref<10x32xf32, #tpu.memory_space<vmem>>, vector<1x32xf32>
    %c8 = arith.constant 8 : index
    %c0_11 = arith.constant 0 : index
    %10 = vector.load %arg4[%c8, %c0_11] : memref<10x32xf32, #tpu.memory_space<vmem>>, vector<1x32xf32>
    %11 = math.exp %10 : vector<1x32xf32>
    %cst = arith.constant 0.000000e+00 : f32
    %12 = vector.broadcast %cst : f32 to vector<1x32xf32>
    %13 = arith.subf %12, %11 : vector<1x32xf32>
    %c9 = arith.constant 9 : index
    %c0_12 = arith.constant 0 : index
    %14 = vector.load %arg4[%c9, %c0_12] : memref<10x32xf32, #tpu.memory_space<vmem>>, vector<1x32xf32>
    %15 = tpu.iota {dimensions = array<i32: 0>} : vector<8x32xi32>
    %c0_i32 = arith.constant 0 : i32
    %16 = vector.broadcast %c0_i32 : i32 to vector<8x32xi32>
    %17 = arith.cmpi eq, %15, %16 : vector<8x32xi32>
    %18 = tpu.iota {dimensions = array<i32: 0>} : vector<8x1xi32>
    %19 = arith.sitofp %18 : vector<8x1xi32> to vector<8x1xf32>
    %20 = tpu.iota {dimensions = array<i32: 0>} : vector<8x8xi32>
    %21 = tpu.iota {dimensions = array<i32: 1>} : vector<8x8xi32>
    %22 = arith.cmpi slt, %21, %20 : vector<8x8xi32>
    %23 = arith.extui %22 : vector<8x8xi1> to vector<8x8xi32>
    %24 = arith.sitofp %23 : vector<8x8xi32> to vector<8x8xf32>
    %25 = vector.broadcast %13 : vector<1x32xf32> to vector<8x32xf32>
    %26 = vector.broadcast %19 : vector<8x1xf32> to vector<8x32xf32>
    %27 = arith.mulf %25, %26 : vector<8x32xf32>
    %28 = math.exp %27 : vector<8x32xf32>
    %cst_13 = arith.constant 0.000000e+00 : f32
    %29 = vector.broadcast %cst_13 : f32 to vector<1x32xf32>
    %30 = arith.subf %29, %13 : vector<1x32xf32>
    %cst_14 = arith.constant 1.000000e+00 : f32
    %31 = vector.broadcast %cst_14 : f32 to vector<8x1xf32>
    %32 = arith.addf %19, %31 : vector<8x1xf32>
    %33 = vector.broadcast %30 : vector<1x32xf32> to vector<8x32xf32>
    %34 = vector.broadcast %32 : vector<8x1xf32> to vector<8x32xf32>
    %35 = arith.mulf %33, %34 : vector<8x32xf32>
    %36 = math.exp %35 : vector<8x32xf32>
    %cst_15 = arith.constant 7.000000e+00 : f32
    %37 = vector.broadcast %cst_15 : f32 to vector<8x1xf32>
    %38 = arith.subf %37, %19 : vector<8x1xf32>
    %39 = vector.broadcast %13 : vector<1x32xf32> to vector<8x32xf32>
    %40 = vector.broadcast %38 : vector<8x1xf32> to vector<8x32xf32>
    %41 = arith.mulf %39, %40 : vector<8x32xf32>
    %42 = math.exp %41 : vector<8x32xf32>
    %43 = tpu.transpose %13, [1, 0] : vector<1x32xf32> -> vector<32x1xf32>
    %cst_16 = arith.constant 8.000000e+00 : f32
    %44 = vector.broadcast %cst_16 : f32 to vector<32x1xf32>
    %45 = arith.mulf %43, %44 : vector<32x1xf32>
    %46 = math.exp %45 : vector<32x1xf32>
    %cst_17 = arith.constant dense<0.000000e+00> : vector<8xf32>
    %47 = vector.multi_reduction <add>, %1, %cst_17 [1] : vector<8x32xf32> to vector<8xf32>
    %48 = vector.shape_cast %47 : vector<8xf32> to vector<8x1xf32>
    %cst_18 = arith.constant 3.200000e+01 : f32
    %49 = vector.broadcast %cst_18 : f32 to vector<8x1xf32>
    %50 = arith.divf %48, %49 : vector<8x1xf32>
    %51 = vector.broadcast %50 : vector<8x1xf32> to vector<8x32xf32>
    %52 = arith.subf %1, %51 : vector<8x32xf32>
    %53 = arith.mulf %52, %52 : vector<8x32xf32>
    %cst_19 = arith.constant dense<0.000000e+00> : vector<8xf32>
    %54 = vector.multi_reduction <add>, %53, %cst_19 [1] : vector<8x32xf32> to vector<8xf32>
    %55 = vector.shape_cast %54 : vector<8xf32> to vector<8x1xf32>
    %cst_20 = arith.constant 3.200000e+01 : f32
    %56 = vector.broadcast %cst_20 : f32 to vector<8x1xf32>
    %57 = arith.divf %55, %56 : vector<8x1xf32>
    %cst_21 = arith.constant 9.99999974E-6 : f32
    %58 = vector.broadcast %cst_21 : f32 to vector<8x1xf32>
    %59 = arith.addf %57, %58 : vector<8x1xf32>
    %60 = math.rsqrt %59 : vector<8x1xf32>
    %61 = vector.broadcast %60 : vector<8x1xf32> to vector<8x32xf32>
    %62 = arith.mulf %52, %61 : vector<8x32xf32>
    %63 = vector.broadcast %2 : vector<1x32xf32> to vector<8x32xf32>
    %64 = arith.mulf %62, %63 : vector<8x32xf32>
    %65 = vector.broadcast %3 : vector<1x32xf32> to vector<8x32xf32>
    %66 = arith.addf %64, %65 : vector<8x32xf32>
    %cst_22 = arith.constant dense<0.000000e+00> : vector<8xf32>
    %67 = vector.multi_reduction <add>, %66, %cst_22 [1] : vector<8x32xf32> to vector<8xf32>
    %68 = vector.shape_cast %67 : vector<8xf32> to vector<8x1xf32>
    %cst_23 = arith.constant 3.200000e+01 : f32
    %69 = vector.broadcast %cst_23 : f32 to vector<8x1xf32>
    %70 = arith.divf %68, %69 : vector<8x1xf32>
    %71 = vector.broadcast %70 : vector<8x1xf32> to vector<8x32xf32>
    %72 = arith.subf %66, %71 : vector<8x32xf32>
    %73 = arith.mulf %72, %72 : vector<8x32xf32>
    %cst_24 = arith.constant dense<0.000000e+00> : vector<8xf32>
    %74 = vector.multi_reduction <add>, %73, %cst_24 [1] : vector<8x32xf32> to vector<8xf32>
    %75 = vector.shape_cast %74 : vector<8xf32> to vector<8x1xf32>
    %cst_25 = arith.constant 3.200000e+01 : f32
    %76 = vector.broadcast %cst_25 : f32 to vector<8x1xf32>
    %77 = arith.divf %75, %76 : vector<8x1xf32>
    %cst_26 = arith.constant 9.99999974E-6 : f32
    %78 = vector.broadcast %cst_26 : f32 to vector<8x1xf32>
    %79 = arith.addf %77, %78 : vector<8x1xf32>
    %80 = math.rsqrt %79 : vector<8x1xf32>
    %81 = vector.broadcast %80 : vector<8x1xf32> to vector<8x32xf32>
    %82 = arith.mulf %72, %81 : vector<8x32xf32>
    %83 = vector.broadcast %4 : vector<1x32xf32> to vector<8x32xf32>
    %84 = arith.mulf %82, %83 : vector<8x32xf32>
    %85 = vector.broadcast %5 : vector<1x32xf32> to vector<8x32xf32>
    %86 = arith.addf %84, %85 : vector<8x32xf32>
    %c0_27 = arith.constant 0 : index
    %c0_28 = arith.constant 0 : index
    %c0_29 = arith.constant 0 : index
    %87 = vector.load %arg2[%c0_27, %c0_28, %c0_29] : memref<1x2x32xf32, #tpu.memory_space<vmem>>, vector<1x1x32xf32>
    %88 = vector.shape_cast %87 : vector<1x1x32xf32> to vector<1x32xf32>
    %c1_i32 = arith.constant 1 : i32
    %89 = tpu.dynamic_rotate %86 by %c1_i32 dim 0 : vector<8x32xf32>, i32 -> vector<8x32xf32>
    %90 = vector.shape_cast %88 : vector<1x32xf32> to vector<1x32xf32>
    %91 = vector.broadcast %90 : vector<1x32xf32> to vector<8x32xf32>
    %92 = arith.select %17, %91, %89 : vector<8x32xi1>, vector<8x32xf32>
    %c0_30 = arith.constant 0 : index
    %c0_31 = arith.constant 0 : index
    %93 = vector.load %arg5[%c0_30, %c0_31] : memref<64x128xf32, #tpu.memory_space<vmem>>, vector<32x128xf32>
    %cst_32 = arith.constant dense<0.000000e+00> : vector<8x128xf32>
    %94 = tpu.matmul %86, %93, %cst_32 {dimension_numbers = #tpu.dot_dimension_numbers<[1], [0], [0], [1], [0, 0, 1, 1], [], []>, precision = #tpu.contract_precision<fp32>} : vector<8x32xf32>, vector<32x128xf32>, vector<8x128xf32> -> vector<8x128xf32>
    %c32 = arith.constant 32 : index
    %c0_33 = arith.constant 0 : index
    %95 = vector.load %arg5[%c32, %c0_33] : memref<64x128xf32, #tpu.memory_space<vmem>>, vector<32x128xf32>
    %cst_34 = arith.constant dense<0.000000e+00> : vector<8x128xf32>
    %96 = tpu.matmul %92, %95, %cst_34 {dimension_numbers = #tpu.dot_dimension_numbers<[1], [0], [0], [1], [0, 0, 1, 1], [], []>, precision = #tpu.contract_precision<fp32>} : vector<8x32xf32>, vector<32x128xf32>, vector<8x128xf32> -> vector<8x128xf32>
    %97 = arith.addf %94, %96 : vector<8x128xf32>
    %98 = vector.extract_strided_slice %97 {offsets = [0, 96], sizes = [8, 32], strides = [1, 1]} : vector<8x128xf32> to vector<8x32xf32>
    %99 = arith.negf %98 : vector<8x32xf32>
    %100 = math.exp %99 : vector<8x32xf32>
    %cst_35 = arith.constant 1.000000e+00 : f32
    %101 = vector.broadcast %cst_35 : f32 to vector<8x32xf32>
    %102 = arith.addf %101, %100 : vector<8x32xf32>
    %103 = arith.divf %101, %102 : vector<8x32xf32>
    %104 = arith.mulf %98, %103 : vector<8x32xf32>
    %cst_36 = arith.constant 0.000000e+00 : f32
    %105 = vector.broadcast %cst_36 : f32 to vector<8x32xf32>
    %106 = vector.extract_strided_slice %97 {offsets = [0, 0], sizes = [8, 16], strides = [1, 1]} : vector<8x128xf32> to vector<8x16xf32>
    %107 = vector.extract_strided_slice %97 {offsets = [0, 32], sizes = [8, 16], strides = [1, 1]} : vector<8x128xf32> to vector<8x16xf32>
    %108 = vector.extract_strided_slice %97 {offsets = [0, 64], sizes = [8, 16], strides = [1, 1]} : vector<8x128xf32> to vector<8x16xf32>
    %109 = vector.extract_strided_slice %14 {offsets = [0, 0], sizes = [1, 16], strides = [1, 1]} : vector<1x32xf32> to vector<1x16xf32>
    %110 = vector.extract_strided_slice %28 {offsets = [0, 0], sizes = [8, 16], strides = [1, 1]} : vector<8x32xf32> to vector<8x16xf32>
    %111 = arith.mulf %106, %110 : vector<8x16xf32>
    %c0_37 = arith.constant 0 : index
    %c0_38 = arith.constant 0 : index
    %c0_39 = arith.constant 0 : index
    %c0_40 = arith.constant 0 : index
    %112 = vector.load %arg3[%c0_37, %c0_38, %c0_39, %c0_40] : memref<1x2x16x16xf32, #tpu.memory_space<vmem>>, vector<1x1x16x16xf32>
    %113 = vector.shape_cast %112 : vector<1x1x16x16xf32> to vector<16x16xf32>
    %114 = vector.extract_strided_slice %36 {offsets = [0, 0], sizes = [8, 16], strides = [1, 1]} : vector<8x32xf32> to vector<8x16xf32>
    %115 = arith.mulf %107, %114 : vector<8x16xf32>
    %cst_41 = arith.constant dense<0.000000e+00> : vector<8x8xf32>
    %116 = tpu.matmul %111, %115, %cst_41 {dimension_numbers = #tpu.dot_dimension_numbers<[1], [1], [0], [0], [0, 0, 1, 0], [], []>, precision = #tpu.contract_precision<fp32>} : vector<8x16xf32>, vector<8x16xf32>, vector<8x8xf32> -> vector<8x8xf32>
    %117 = arith.mulf %116, %24 : vector<8x8xf32>
    %118 = vector.broadcast %109 : vector<1x16xf32> to vector<8x16xf32>
    %119 = arith.mulf %106, %118 : vector<8x16xf32>
    %120 = arith.mulf %119, %107 : vector<8x16xf32>
    %cst_42 = arith.constant dense<0.000000e+00> : vector<8xf32>
    %121 = vector.multi_reduction <add>, %120, %cst_42 [1] : vector<8x16xf32> to vector<8xf32>
    %122 = vector.shape_cast %121 : vector<8xf32> to vector<8x1xf32>
    %123 = vector.broadcast %122 : vector<8x1xf32> to vector<8x16xf32>
    %124 = arith.mulf %123, %108 : vector<8x16xf32>
    %cst_43 = arith.constant dense<0.000000e+00> : vector<8x16xf32>
    %125 = tpu.matmul %111, %113, %cst_43 {dimension_numbers = #tpu.dot_dimension_numbers<[1], [0], [0], [1], [0, 0, 1, 1], [], []>, precision = #tpu.contract_precision<fp32>} : vector<8x16xf32>, vector<16x16xf32>, vector<8x16xf32> -> vector<8x16xf32>
    %126 = arith.addf %124, %125 : vector<8x16xf32>
    %cst_44 = arith.constant dense<0.000000e+00> : vector<8x16xf32>
    %127 = tpu.matmul %117, %108, %cst_44 {dimension_numbers = #tpu.dot_dimension_numbers<[1], [0], [0], [1], [0, 0, 1, 1], [], []>, precision = #tpu.contract_precision<fp32>} : vector<8x8xf32>, vector<8x16xf32>, vector<8x16xf32> -> vector<8x16xf32>
    %128 = arith.addf %126, %127 : vector<8x16xf32>
    %129 = vector.extract_strided_slice %46 {offsets = [0, 0], sizes = [16, 1], strides = [1, 1]} : vector<32x1xf32> to vector<16x1xf32>
    %130 = vector.broadcast %129 : vector<16x1xf32> to vector<16x16xf32>
    %131 = arith.mulf %130, %113 : vector<16x16xf32>
    %132 = vector.extract_strided_slice %42 {offsets = [0, 0], sizes = [8, 16], strides = [1, 1]} : vector<8x32xf32> to vector<8x16xf32>
    %133 = arith.mulf %107, %132 : vector<8x16xf32>
    %cst_45 = arith.constant dense<0.000000e+00> : vector<16x16xf32>
    %134 = tpu.matmul %133, %108, %cst_45 {dimension_numbers = #tpu.dot_dimension_numbers<[0], [0], [1], [1], [0, 1, 1, 1], [], []>, precision = #tpu.contract_precision<fp32>} : vector<8x16xf32>, vector<8x16xf32>, vector<16x16xf32> -> vector<16x16xf32>
    %135 = arith.addf %131, %134 : vector<16x16xf32>
    %c0_46 = arith.constant 0 : index
    %c0_47 = arith.constant 0 : index
    %c0_48 = arith.constant 0 : index
    %c0_49 = arith.constant 0 : index
    %136 = vector.load %arg10[%c0_46, %c0_47, %c0_48, %c0_49] : memref<1x2x16x16xf32, #tpu.memory_space<vmem>>, vector<1x1x16x16xf32>
    %137 = vector.shape_cast %136 : vector<1x1x16x16xf32> to vector<16x16xf32>
    %138 = vector.shape_cast %135 : vector<16x16xf32> to vector<1x1x16x16xf32>
    tpu.vector_store %arg10[%c0_46, %c0_47, %c0_48, %c0_49], %138 {strides = array<i32>} : memref<1x2x16x16xf32, #tpu.memory_space<vmem>>, vector<1x1x16x16xf32>,
    %cst_50 = arith.constant dense<0.000000e+00> : vector<8xf32>
    %139 = vector.multi_reduction <add>, %128, %cst_50 [1] : vector<8x16xf32> to vector<8xf32>
    %140 = vector.shape_cast %139 : vector<8xf32> to vector<8x1xf32>
    %cst_51 = arith.constant 1.600000e+01 : f32
    %141 = vector.broadcast %cst_51 : f32 to vector<8x1xf32>
    %142 = arith.divf %140, %141 : vector<8x1xf32>
    %143 = vector.broadcast %142 : vector<8x1xf32> to vector<8x16xf32>
    %144 = arith.subf %128, %143 : vector<8x16xf32>
    %145 = arith.mulf %144, %144 : vector<8x16xf32>
    %cst_52 = arith.constant dense<0.000000e+00> : vector<8xf32>
    %146 = vector.multi_reduction <add>, %145, %cst_52 [1] : vector<8x16xf32> to vector<8xf32>
    %147 = vector.shape_cast %146 : vector<8xf32> to vector<8x1xf32>
    %cst_53 = arith.constant 1.600000e+01 : f32
    %148 = vector.broadcast %cst_53 : f32 to vector<8x1xf32>
    %149 = arith.divf %147, %148 : vector<8x1xf32>
    %150 = vector.broadcast %142 : vector<8x1xf32> to vector<8x16xf32>
    %151 = arith.subf %128, %150 : vector<8x16xf32>
    %cst_54 = arith.constant 6.400000e-04 : f32
    %152 = vector.broadcast %cst_54 : f32 to vector<8x1xf32>
    %153 = arith.addf %149, %152 : vector<8x1xf32>
    %154 = math.rsqrt %153 : vector<8x1xf32>
    %155 = vector.broadcast %154 : vector<8x1xf32> to vector<8x16xf32>
    %156 = arith.mulf %151, %155 : vector<8x16xf32>
    %157 = vector.extract_strided_slice %8 {offsets = [0, 0], sizes = [1, 16], strides = [1, 1]} : vector<1x32xf32> to vector<1x16xf32>
    %158 = vector.broadcast %157 : vector<1x16xf32> to vector<8x16xf32>
    %159 = arith.mulf %156, %158 : vector<8x16xf32>
    %160 = vector.extract_strided_slice %9 {offsets = [0, 0], sizes = [1, 16], strides = [1, 1]} : vector<1x32xf32> to vector<1x16xf32>
    %161 = vector.broadcast %160 : vector<1x16xf32> to vector<8x16xf32>
    %162 = arith.addf %159, %161 : vector<8x16xf32>
    %163 = vector.extract_strided_slice %104 {offsets = [0, 0], sizes = [8, 16], strides = [1, 1]} : vector<8x32xf32> to vector<8x16xf32>
    %164 = arith.mulf %162, %163 : vector<8x16xf32>
    %c0_55 = arith.constant 0 : index
    %c0_56 = arith.constant 0 : index
    %165 = vector.load %arg7[%c0_55, %c0_56] : memref<96x32xf32, #tpu.memory_space<vmem>>, vector<16x32xf32>
    %cst_57 = arith.constant dense<0.000000e+00> : vector<8x32xf32>
    %166 = tpu.matmul %164, %165, %cst_57 {dimension_numbers = #tpu.dot_dimension_numbers<[1], [0], [0], [1], [0, 0, 1, 1], [], []>, precision = #tpu.contract_precision<fp32>} : vector<8x16xf32>, vector<16x32xf32>, vector<8x32xf32> -> vector<8x32xf32>
    %167 = arith.addf %105, %166 : vector<8x32xf32>
    %168 = vector.extract_strided_slice %97 {offsets = [0, 16], sizes = [8, 16], strides = [1, 1]} : vector<8x128xf32> to vector<8x16xf32>
    %169 = vector.extract_strided_slice %97 {offsets = [0, 48], sizes = [8, 16], strides = [1, 1]} : vector<8x128xf32> to vector<8x16xf32>
    %170 = vector.extract_strided_slice %97 {offsets = [0, 80], sizes = [8, 16], strides = [1, 1]} : vector<8x128xf32> to vector<8x16xf32>
    %171 = vector.extract_strided_slice %14 {offsets = [0, 16], sizes = [1, 16], strides = [1, 1]} : vector<1x32xf32> to vector<1x16xf32>
    %172 = vector.extract_strided_slice %28 {offsets = [0, 16], sizes = [8, 16], strides = [1, 1]} : vector<8x32xf32> to vector<8x16xf32>
    %173 = arith.mulf %168, %172 : vector<8x16xf32>
    %c0_58 = arith.constant 0 : index
    %c1_59 = arith.constant 1 : index
    %c0_60 = arith.constant 0 : index
    %c0_61 = arith.constant 0 : index
    %174 = vector.load %arg3[%c0_58, %c1_59, %c0_60, %c0_61] : memref<1x2x16x16xf32, #tpu.memory_space<vmem>>, vector<1x1x16x16xf32>
    %175 = vector.shape_cast %174 : vector<1x1x16x16xf32> to vector<16x16xf32>
    %176 = vector.extract_strided_slice %36 {offsets = [0, 16], sizes = [8, 16], strides = [1, 1]} : vector<8x32xf32> to vector<8x16xf32>
    %177 = arith.mulf %169, %176 : vector<8x16xf32>
    %cst_62 = arith.constant dense<0.000000e+00> : vector<8x8xf32>
    %178 = tpu.matmul %173, %177, %cst_62 {dimension_numbers = #tpu.dot_dimension_numbers<[1], [1], [0], [0], [0, 0, 1, 0], [], []>, precision = #tpu.contract_precision<fp32>} : vector<8x16xf32>, vector<8x16xf32>, vector<8x8xf32> -> vector<8x8xf32>
    %179 = arith.mulf %178, %24 : vector<8x8xf32>
    %180 = vector.broadcast %171 : vector<1x16xf32> to vector<8x16xf32>
    %181 = arith.mulf %168, %180 : vector<8x16xf32>
    %182 = arith.mulf %181, %169 : vector<8x16xf32>
    %cst_63 = arith.constant dense<0.000000e+00> : vector<8xf32>
    %183 = vector.multi_reduction <add>, %182, %cst_63 [1] : vector<8x16xf32> to vector<8xf32>
    %184 = vector.shape_cast %183 : vector<8xf32> to vector<8x1xf32>
    %185 = vector.broadcast %184 : vector<8x1xf32> to vector<8x16xf32>
    %186 = arith.mulf %185, %170 : vector<8x16xf32>
    %cst_64 = arith.constant dense<0.000000e+00> : vector<8x16xf32>
    %187 = tpu.matmul %173, %175, %cst_64 {dimension_numbers = #tpu.dot_dimension_numbers<[1], [0], [0], [1], [0, 0, 1, 1], [], []>, precision = #tpu.contract_precision<fp32>} : vector<8x16xf32>, vector<16x16xf32>, vector<8x16xf32> -> vector<8x16xf32>
    %188 = arith.addf %186, %187 : vector<8x16xf32>
    %cst_65 = arith.constant dense<0.000000e+00> : vector<8x16xf32>
    %189 = tpu.matmul %179, %170, %cst_65 {dimension_numbers = #tpu.dot_dimension_numbers<[1], [0], [0], [1], [0, 0, 1, 1], [], []>, precision = #tpu.contract_precision<fp32>} : vector<8x8xf32>, vector<8x16xf32>, vector<8x16xf32> -> vector<8x16xf32>
    %190 = arith.addf %188, %189 : vector<8x16xf32>
    %191 = vector.extract_strided_slice %46 {offsets = [16, 0], sizes = [16, 1], strides = [1, 1]} : vector<32x1xf32> to vector<16x1xf32>
    %192 = vector.broadcast %191 : vector<16x1xf32> to vector<16x16xf32>
    %193 = arith.mulf %192, %175 : vector<16x16xf32>
    %194 = vector.extract_strided_slice %42 {offsets = [0, 16], sizes = [8, 16], strides = [1, 1]} : vector<8x32xf32> to vector<8x16xf32>
    %195 = arith.mulf %169, %194 : vector<8x16xf32>
    %cst_66 = arith.constant dense<0.000000e+00> : vector<16x16xf32>
    %196 = tpu.matmul %195, %170, %cst_66 {dimension_numbers = #tpu.dot_dimension_numbers<[0], [0], [1], [1], [0, 1, 1, 1], [], []>, precision = #tpu.contract_precision<fp32>} : vector<8x16xf32>, vector<8x16xf32>, vector<16x16xf32> -> vector<16x16xf32>
    %197 = arith.addf %193, %196 : vector<16x16xf32>
    %c0_67 = arith.constant 0 : index
    %c1_68 = arith.constant 1 : index
    %c0_69 = arith.constant 0 : index
    %c0_70 = arith.constant 0 : index
    %198 = vector.load %arg10[%c0_67, %c1_68, %c0_69, %c0_70] : memref<1x2x16x16xf32, #tpu.memory_space<vmem>>, vector<1x1x16x16xf32>
    %199 = vector.shape_cast %198 : vector<1x1x16x16xf32> to vector<16x16xf32>
    %200 = vector.shape_cast %197 : vector<16x16xf32> to vector<1x1x16x16xf32>
    tpu.vector_store %arg10[%c0_67, %c1_68, %c0_69, %c0_70], %200 {strides = array<i32>} : memref<1x2x16x16xf32, #tpu.memory_space<vmem>>, vector<1x1x16x16xf32>,
    %cst_71 = arith.constant dense<0.000000e+00> : vector<8xf32>
    %201 = vector.multi_reduction <add>, %190, %cst_71 [1] : vector<8x16xf32> to vector<8xf32>
    %202 = vector.shape_cast %201 : vector<8xf32> to vector<8x1xf32>
    %cst_72 = arith.constant 1.600000e+01 : f32
    %203 = vector.broadcast %cst_72 : f32 to vector<8x1xf32>
    %204 = arith.divf %202, %203 : vector<8x1xf32>
    %205 = vector.broadcast %204 : vector<8x1xf32> to vector<8x16xf32>
    %206 = arith.subf %190, %205 : vector<8x16xf32>
    %207 = arith.mulf %206, %206 : vector<8x16xf32>
    %cst_73 = arith.constant dense<0.000000e+00> : vector<8xf32>
    %208 = vector.multi_reduction <add>, %207, %cst_73 [1] : vector<8x16xf32> to vector<8xf32>
    %209 = vector.shape_cast %208 : vector<8xf32> to vector<8x1xf32>
    %cst_74 = arith.constant 1.600000e+01 : f32
    %210 = vector.broadcast %cst_74 : f32 to vector<8x1xf32>
    %211 = arith.divf %209, %210 : vector<8x1xf32>
    %212 = vector.broadcast %204 : vector<8x1xf32> to vector<8x16xf32>
    %213 = arith.subf %190, %212 : vector<8x16xf32>
    %cst_75 = arith.constant 6.400000e-04 : f32
    %214 = vector.broadcast %cst_75 : f32 to vector<8x1xf32>
    %215 = arith.addf %211, %214 : vector<8x1xf32>
    %216 = math.rsqrt %215 : vector<8x1xf32>
    %217 = vector.broadcast %216 : vector<8x1xf32> to vector<8x16xf32>
    %218 = arith.mulf %213, %217 : vector<8x16xf32>
    %219 = vector.extract_strided_slice %8 {offsets = [0, 16], sizes = [1, 16], strides = [1, 1]} : vector<1x32xf32> to vector<1x16xf32>
    %220 = vector.broadcast %219 : vector<1x16xf32> to vector<8x16xf32>
    %221 = arith.mulf %218, %220 : vector<8x16xf32>
    %222 = vector.extract_strided_slice %9 {offsets = [0, 16], sizes = [1, 16], strides = [1, 1]} : vector<1x32xf32> to vector<1x16xf32>
    %223 = vector.broadcast %222 : vector<1x16xf32> to vector<8x16xf32>
    %224 = arith.addf %221, %223 : vector<8x16xf32>
    %225 = vector.extract_strided_slice %104 {offsets = [0, 16], sizes = [8, 16], strides = [1, 1]} : vector<8x32xf32> to vector<8x16xf32>
    %226 = arith.mulf %224, %225 : vector<8x16xf32>
    %c16 = arith.constant 16 : index
    %c0_76 = arith.constant 0 : index
    %227 = vector.load %arg7[%c16, %c0_76] : memref<96x32xf32, #tpu.memory_space<vmem>>, vector<16x32xf32>
    %cst_77 = arith.constant dense<0.000000e+00> : vector<8x32xf32>
    %228 = tpu.matmul %226, %227, %cst_77 {dimension_numbers = #tpu.dot_dimension_numbers<[1], [0], [0], [1], [0, 0, 1, 1], [], []>, precision = #tpu.contract_precision<fp32>} : vector<8x16xf32>, vector<16x32xf32>, vector<8x32xf32> -> vector<8x32xf32>
    %229 = arith.addf %167, %228 : vector<8x32xf32>
    %230 = arith.addf %66, %229 : vector<8x32xf32>
    %cst_78 = arith.constant dense<0.000000e+00> : vector<8xf32>
    %231 = vector.multi_reduction <add>, %230, %cst_78 [1] : vector<8x32xf32> to vector<8xf32>
    %232 = vector.shape_cast %231 : vector<8xf32> to vector<8x1xf32>
    %cst_79 = arith.constant 3.200000e+01 : f32
    %233 = vector.broadcast %cst_79 : f32 to vector<8x1xf32>
    %234 = arith.divf %232, %233 : vector<8x1xf32>
    %235 = vector.broadcast %234 : vector<8x1xf32> to vector<8x32xf32>
    %236 = arith.subf %230, %235 : vector<8x32xf32>
    %237 = arith.mulf %236, %236 : vector<8x32xf32>
    %cst_80 = arith.constant dense<0.000000e+00> : vector<8xf32>
    %238 = vector.multi_reduction <add>, %237, %cst_80 [1] : vector<8x32xf32> to vector<8xf32>
    %239 = vector.shape_cast %238 : vector<8xf32> to vector<8x1xf32>
    %cst_81 = arith.constant 3.200000e+01 : f32
    %240 = vector.broadcast %cst_81 : f32 to vector<8x1xf32>
    %241 = arith.divf %239, %240 : vector<8x1xf32>
    %cst_82 = arith.constant 9.99999974E-6 : f32
    %242 = vector.broadcast %cst_82 : f32 to vector<8x1xf32>
    %243 = arith.addf %241, %242 : vector<8x1xf32>
    %244 = math.rsqrt %243 : vector<8x1xf32>
    %245 = vector.broadcast %244 : vector<8x1xf32> to vector<8x32xf32>
    %246 = arith.mulf %236, %245 : vector<8x32xf32>
    %247 = vector.broadcast %6 : vector<1x32xf32> to vector<8x32xf32>
    %248 = arith.mulf %246, %247 : vector<8x32xf32>
    %249 = vector.broadcast %7 : vector<1x32xf32> to vector<8x32xf32>
    %250 = arith.addf %248, %249 : vector<8x32xf32>
    %c0_83 = arith.constant 0 : index
    %c1_84 = arith.constant 1 : index
    %c0_85 = arith.constant 0 : index
    %251 = vector.load %arg2[%c0_83, %c1_84, %c0_85] : memref<1x2x32xf32, #tpu.memory_space<vmem>>, vector<1x1x32xf32>
    %252 = vector.shape_cast %251 : vector<1x1x32xf32> to vector<1x32xf32>
    %c1_i32_86 = arith.constant 1 : i32
    %253 = tpu.dynamic_rotate %250 by %c1_i32_86 dim 0 : vector<8x32xf32>, i32 -> vector<8x32xf32>
    %254 = vector.shape_cast %252 : vector<1x32xf32> to vector<1x32xf32>
    %255 = vector.broadcast %254 : vector<1x32xf32> to vector<8x32xf32>
    %256 = arith.select %17, %255, %253 : vector<8x32xi1>, vector<8x32xf32>
    %c0_87 = arith.constant 0 : index
    %c0_88 = arith.constant 0 : index
    %257 = vector.load %arg6[%c0_87, %c0_88] : memref<64x96xf32, #tpu.memory_space<vmem>>, vector<32x96xf32>
    %cst_89 = arith.constant dense<0.000000e+00> : vector<8x96xf32>
    %258 = tpu.matmul %250, %257, %cst_89 {dimension_numbers = #tpu.dot_dimension_numbers<[1], [0], [0], [1], [0, 0, 1, 1], [], []>, precision = #tpu.contract_precision<fp32>} : vector<8x32xf32>, vector<32x96xf32>, vector<8x96xf32> -> vector<8x96xf32>
    %c32_90 = arith.constant 32 : index
    %c0_91 = arith.constant 0 : index
    %259 = vector.load %arg6[%c32_90, %c0_91] : memref<64x96xf32, #tpu.memory_space<vmem>>, vector<32x96xf32>
    %cst_92 = arith.constant dense<0.000000e+00> : vector<8x96xf32>
    %260 = tpu.matmul %256, %259, %cst_92 {dimension_numbers = #tpu.dot_dimension_numbers<[1], [0], [0], [1], [0, 0, 1, 1], [], []>, precision = #tpu.contract_precision<fp32>} : vector<8x32xf32>, vector<32x96xf32>, vector<8x96xf32> -> vector<8x96xf32>
    %261 = arith.addf %258, %260 : vector<8x96xf32>
    %262 = vector.extract_strided_slice %261 {offsets = [0, 0], sizes = [8, 64], strides = [1, 1]} : vector<8x96xf32> to vector<8x64xf32>
    %cst_93 = arith.constant 0.000000e+00 : f32
    %263 = vector.broadcast %cst_93 : f32 to vector<8x64xf32>
    %264 = arith.maximumf %262, %263 : vector<8x64xf32>
    %265 = arith.mulf %264, %264 : vector<8x64xf32>
    %c32_94 = arith.constant 32 : index
    %c0_95 = arith.constant 0 : index
    %266 = vector.load %arg7[%c32_94, %c0_95] : memref<96x32xf32, #tpu.memory_space<vmem>>, vector<64x32xf32>
    %cst_96 = arith.constant dense<0.000000e+00> : vector<8x32xf32>
    %267 = tpu.matmul %265, %266, %cst_96 {dimension_numbers = #tpu.dot_dimension_numbers<[1], [0], [0], [1], [0, 0, 1, 1], [], []>, precision = #tpu.contract_precision<fp32>} : vector<8x64xf32>, vector<64x32xf32>, vector<8x32xf32> -> vector<8x32xf32>
    %268 = vector.extract_strided_slice %261 {offsets = [0, 64], sizes = [8, 32], strides = [1, 1]} : vector<8x96xf32> to vector<8x32xf32>
    %269 = arith.negf %268 : vector<8x32xf32>
    %270 = math.exp %269 : vector<8x32xf32>
    %cst_97 = arith.constant 1.000000e+00 : f32
    %271 = vector.broadcast %cst_97 : f32 to vector<8x32xf32>
    %272 = arith.addf %271, %270 : vector<8x32xf32>
    %273 = arith.divf %271, %272 : vector<8x32xf32>
    %274 = arith.mulf %273, %267 : vector<8x32xf32>
    %275 = arith.addf %230, %274 : vector<8x32xf32>
    %c0_98 = arith.constant 0 : index
    %c0_99 = arith.constant 0 : index
    %c0_100 = arith.constant 0 : index
    %276 = vector.load %arg8[%c0_98, %c0_99, %c0_100] : memref<1x8x32xf32, #tpu.memory_space<vmem>>, vector<1x8x32xf32>
    %277 = vector.shape_cast %276 : vector<1x8x32xf32> to vector<8x32xf32>
    %278 = vector.shape_cast %275 : vector<8x32xf32> to vector<1x8x32xf32>
    tpu.vector_store %arg8[%c0_98, %c0_99, %c0_100], %278 {strides = array<i32>} : memref<1x8x32xf32, #tpu.memory_space<vmem>>, vector<1x8x32xf32>,
    %279 = vector.extract_strided_slice %86 {offsets = [7, 0], sizes = [1, 32], strides = [1, 1]} : vector<8x32xf32> to vector<1x32xf32>
    %c0_101 = arith.constant 0 : index
    %c0_102 = arith.constant 0 : index
    %c0_103 = arith.constant 0 : index
    %280 = vector.load %arg9[%c0_101, %c0_102, %c0_103] : memref<1x2x32xf32, #tpu.memory_space<vmem>>, vector<1x1x32xf32>
    %281 = vector.shape_cast %280 : vector<1x1x32xf32> to vector<1x32xf32>
    %282 = vector.shape_cast %279 : vector<1x32xf32> to vector<1x1x32xf32>
    tpu.vector_store %arg9[%c0_101, %c0_102, %c0_103], %282 {strides = array<i32>} : memref<1x2x32xf32, #tpu.memory_space<vmem>>, vector<1x1x32xf32>,
    %283 = vector.extract_strided_slice %250 {offsets = [7, 0], sizes = [1, 32], strides = [1, 1]} : vector<8x32xf32> to vector<1x32xf32>
    %c0_104 = arith.constant 0 : index
    %c1_105 = arith.constant 1 : index
    %c0_106 = arith.constant 0 : index
    %284 = vector.load %arg9[%c0_104, %c1_105, %c0_106] : memref<1x2x32xf32, #tpu.memory_space<vmem>>, vector<1x1x32xf32>
    %285 = vector.shape_cast %284 : vector<1x1x32xf32> to vector<1x32xf32>
    %286 = vector.shape_cast %283 : vector<1x32xf32> to vector<1x1x32xf32>
    tpu.vector_store %arg9[%c0_104, %c1_105, %c0_106], %286 {strides = array<i32>} : memref<1x2x32xf32, #tpu.memory_space<vmem>>, vector<1x1x32xf32>,
    return
  }
  func.func @transform_0(%arg0: i32) -> (i32, i32, i32) {
    %c0_i32 = arith.constant 0 : i32
    %c0_i32_0 = arith.constant 0 : i32
    %c0_i32_1 = arith.constant 0 : i32
    return %arg0, %c0_i32, %c0_i32_0 : i32, i32, i32
  }
  func.func @transform_1(%arg0: i32) -> (i32, i32, i32) {
    %c0_i32 = arith.constant 0 : i32
    %c0_i32_0 = arith.constant 0 : i32
    %c0_i32_1 = arith.constant 0 : i32
    return %arg0, %c0_i32, %c0_i32_0 : i32, i32, i32
  }
  func.func @transform_2(%arg0: i32) -> (i32, i32, i32, i32) {
    %c0_i32 = arith.constant 0 : i32
    %c0_i32_0 = arith.constant 0 : i32
    %c0_i32_1 = arith.constant 0 : i32
    %c0_i32_2 = arith.constant 0 : i32
    return %arg0, %c0_i32, %c0_i32_0, %c0_i32_1 : i32, i32, i32, i32
  }
  func.func @transform_3(%arg0: i32) -> (i32, i32) {
    %c0_i32 = arith.constant 0 : i32
    %c0_i32_0 = arith.constant 0 : i32
    %c0_i32_1 = arith.constant 0 : i32
    return %c0_i32, %c0_i32_0 : i32, i32
  }
  func.func @transform_4(%arg0: i32) -> (i32, i32) {
    %c0_i32 = arith.constant 0 : i32
    %c0_i32_0 = arith.constant 0 : i32
    %c0_i32_1 = arith.constant 0 : i32
    return %c0_i32, %c0_i32_0 : i32, i32
  }
  func.func @transform_5(%arg0: i32) -> (i32, i32) {
    %c0_i32 = arith.constant 0 : i32
    %c0_i32_0 = arith.constant 0 : i32
    %c0_i32_1 = arith.constant 0 : i32
    return %c0_i32, %c0_i32_0 : i32, i32
  }
  func.func @transform_6(%arg0: i32) -> (i32, i32) {
    %c0_i32 = arith.constant 0 : i32
    %c0_i32_0 = arith.constant 0 : i32
    %c0_i32_1 = arith.constant 0 : i32
    return %c0_i32, %c0_i32_0 : i32, i32
  }
  func.func @transform_7(%arg0: i32) -> (i32, i32, i32) {
    %c0_i32 = arith.constant 0 : i32
    %c0_i32_0 = arith.constant 0 : i32
    %c0_i32_1 = arith.constant 0 : i32
    return %arg0, %c0_i32, %c0_i32_0 : i32, i32, i32
  }
  func.func @transform_8(%arg0: i32) -> (i32, i32, i32) {
    %c0_i32 = arith.constant 0 : i32
    %c0_i32_0 = arith.constant 0 : i32
    %c0_i32_1 = arith.constant 0 : i32
    return %arg0, %c0_i32, %c0_i32_0 : i32, i32, i32
  }
  func.func @transform_9(%arg0: i32) -> (i32, i32, i32, i32) {
    %c0_i32 = arith.constant 0 : i32
    %c0_i32_0 = arith.constant 0 : i32
    %c0_i32_1 = arith.constant 0 : i32
    %c0_i32_2 = arith.constant 0 : i32
    return %arg0, %c0_i32, %c0_i32_0, %c0_i32_1 : i32, i32, i32, i32
  }
}

</mosaic_0001>

<bundles_post_ra>
// kernel: _rwkv_block.1
= control target key start
LH: loop header
LB: loop body
LE: loop exit
PB: predicated region body
PF: predicated region fallthrough
CT: control target
= control target key end

     0   :  { %s10958_s0 = inlined_call_operand.vmem [shape: f32[2,8,32], index: 0, kind: input, shape index: {}]   ;;  %s10959_s1 = inlined_call_operand.vmem [shape: f32[2,2,32], index: 1, kind: input, shape index: {}]   ;;  %s10960_s2 = inlined_call_operand.vmem [shape: f32[2,2,16,16], index: 2, kind: input, shape index: {}]   ;;  %s10961_s3 = inlined_call_operand.vmem [shape: f32[10,32], index: 3, kind: input, shape index: {}]   ;;  %s10962_s4 = inlined_call_operand.vmem [shape: f32[64,128], index: 4, kind: input, shape index: {}]   ;;  %s10963_s5 = inlined_call_operand.vmem [shape: f32[64,96], index: 5, kind: input, shape index: {}]   ;;  %s10964_s6 = inlined_call_operand.vmem [shape: f32[96,32], index: 6, kind: input, shape index: {}]   ;;  %s10965_s7 = inlined_call_operand.hbm [shape: f32[2,8,32], index: 7, kind: output, shape index: {0}]   ;;  %s10966_s8 = inlined_call_operand.vmem [shape: f32[2,2,32], index: 8, kind: output, shape index: {1}]   ;;  %s10967_s9 = inlined_call_operand.hbm [shape: f32[2,2,16,16], index: 9, kind: output, shape index: {2}]  }
   0x1   :  { %10968 = sst [smem:[#allocation8_spill]] %s10958_s0 }
   0x2   :  { %15 = vsyncpa [#allocation3], 0 }
   0x3   :  { %17 = vsyncpa [#allocation3 + $0x1], 0 }
   0x4   :  { %18 = vsyncpa [#allocation5], 0 }
   0x5   :  { %20 = vsyncpa [#allocation5 + $0x1], 0  ;;  %s9945_s30 = smov 0   ;;  %s9947_s10 = smov 0  }
   0x6   :  { %s9949_s11 = smov 0   ;;  %s9951_s12 = smov 0  }
   0x7 LB: > { %s9966_s13 = sadd.s32 4294967295, %s9879_s12   ;;  %s8173_s14 = sadd.s32 4294967294, %s9879_s12   ;;  %s9879_s12 = sphi %s9951_s12, %s10975_s12   ;;  %s9875_s11 = sphi %s9949_s11, %s10974_s11   ;;  %s9871_s10 = sphi %s9947_s10, %s10973_s10   ;;  %s9867_s30 = sphi %s9945_s30, %s10972_s30  }
   0x8   : > { %s9970_s15 = sadd.s32 1, %s9879_s12   ;;  %s195_s16 = sadd.s32 1, %s9875_s11 }
   0x9   : > { %s192_s17 = ssub.s32 %s9879_s12, %s9970_s15  ;;  %p205_p0 = scmp.ne.s32.totalorder %s9875_s11, %s9871_s10 }
   0xa   : > { %p193_p1 = scmp.eq.s32.totalorder %s192_s17, 0  ;;  %p206_p2 = scmp.eq.s32.totalorder %s9966_s13, 1 }
   0xb   : > { %p211_p3 = scmp.ne.s32.totalorder %s9871_s10, %s9867_s30  ;;  %p212_p4 = scmp.eq.s32.totalorder %s8173_s14, 1 }
   0xc   : > { %s9981_s18 = scalar_select %p193_p1, %s9875_s11, %s195_s16  }
   0xd   : > { %p9983_p5 = por %p206_p2, %p205_p0  ;;  %p9987_p6 = por %p212_p4, %p211_p3 }
   0xe   : > { %p8176_p7 = scmp.ge.s32.totalorder %s9879_s12, 1  ;;  %p316_p8 = scmp.lt.s32.totalorder %s9879_s12, 3 }
  0x10   : > { %p317_p9 = pnand %p8176_p7, %p316_p8 }
  0x11   : > { %p369_p10 = scmp.lt.s32.totalorder (!%p317_p9), %s9966_s13, 1  ;;  %vm473_vm0 = vcmask (!%p317_p9), 261120   ;;  %s10971_s0 = sld [smem:[#allocation8_spill]] (!%p317_p9)  ;;  %v8185_v11 = vld [vmem:[%s10961_s3] ss:$0 sm:$0xff] (!%p317_p9)  ;;  %v533_v23 = vld [vmem:[%s10962_s4 + $0x28] sm:$0xff] (!%p317_p9)  ;;  %v400_v60 = vlaneseq (!%p317_p9) }
  0x12   : > { %320 = sbr.rel (%p317_p9) target bundleno = 3910 (0xf46), region = 48  ;;  %v8186_v13 = vld [vmem:[%s10961_s3 + $0x1] ss:$0 sm:$0xff] (!%p317_p9)  ;;  %v534_v24 = vld [vmem:[%s10962_s4 + $0x30] sm:$0xff] (!%p317_p9)  ;;  %v9881_v25 = vmov (!%p317_p9), 0.0|0.0   ;;  %v543_v27 = vand.u32 (!%p317_p9), 4294901760, %v533_v23 }
  0x13   : > { %v532_v22 = vld [vmem:[%s10962_s4 + $0x20] sm:$0xff] (!%p317_p9)  ;;  %9267 = vmatprep.subr.bf16.mxu0 (!%p317_p9), %v9881_v25  ;;  %v535_v28 = vld [vmem:[%s10962_s4 + $0x38] sm:$0xff] (!%p317_p9)  ;;  %v546_v29 = vand.u32 (!%p317_p9), 4294901760, %v534_v24  ;;  %vm9882_vm1 = vmmov (!%p317_p9), 0   ;;  %v9883_v30 = vmov (!%p317_p9), 0.0   ;;  %v10073_v62 = vshrl.u32 (!%p317_p9), %v400_v60, 7 }
  0x14   : > { %v540_v26 = vand.u32 (!%p317_p9), 4294901760, %v532_v22  ;;  %8549 = vmatprep.mubr.msk.f32.mxu0 (!%p317_p9), %vm9882_vm1, %v9883_v30  ;;  %v549_v31 = vand.u32 (!%p317_p9), 4294901760, %v535_v28  ;;  %8673 = vmatprep.subr.mxu1 (!%p317_p9), %v9883_v30  ;;  %v10041_v34 = vsub.f32 (!%p317_p9), %v533_v23, %v543_v27  ;;  %v395_v56 = vld [vmem:[%s10961_s3 + $0x8] sm:$0x1] (!%p317_p9)  ;;  %vm7989_vm2 = vcmask (!%p317_p9), 261127   ;;  %s9886_s14 = smov (!%p317_p9), 96  }
  0x15   : > { %8675 = vmatprep.mubr.msk.f32.mxu1 (!%p317_p9), %vm9882_vm1, %v9883_v30  ;;  %v10043_v35 = vsub.f32 (!%p317_p9), %v534_v24, %v546_v29  ;;  %v396_v57 = vmul.f32 (!%p317_p9), 1.442695, %v395_v56  ;;  %v10076_v63 = vcvt.s32.f32 (!%p317_p9), %v10073_v62  ;;  %vm402_vm3 = vcmp.eq.s32.totalorder (!%p317_p9), %v10073_v62, 0  ;;  %s9887_s16 = smov (!%p317_p9), 48   ;;  %s9888_s17 = smov (!%p317_p9), 112  }
  0x16   : > { %v10037_v32 = vpack.c.bf16 (!%p317_p9), %v543_v27, %v540_v26  ;;  %v10039_v33 = vsub.f32 (!%p317_p9), %v532_v22, %v540_v26  ;;  %v10045_v36 = vsub.f32 (!%p317_p9), %v535_v28, %v549_v31  ;;  %v10048_v37 = vpack.c.bf16 (!%p317_p9), %v549_v31, %v546_v29 }
  0x17   : > { %v628_v39 = vand.u32 (!%p317_p9), 4294901760, %v10041_v34  ;;  %v635_v44 = vand.u32 (!%p317_p9), 4294901760, %v10043_v35  ;;  %vm1530_vm4 = vcmask (!%p317_p9), 130048   ;;  %vm2464_vm6 = vcmask (!%p317_p9), 64512  }
  0x18   : > { %9269 = vmatpush3.bf16.msra.mxu0 (!%p317_p9), %v10037_v32  ;;  %v621_v38 = vand.u32 (!%p317_p9), 4294901760, %v10039_v33  ;;  %v642_v45 = vand.u32 (!%p317_p9), 4294901760, %v10045_v36  ;;  %v9280_v52 = vpack.c.bf16 (!%p317_p9), %v10041_v34, %v10039_v33  ;;  %v9283_v53 = vpack.c.bf16 (!%p317_p9), %v10045_v36, %v10043_v35 }
  0x19   : > { %s9995_s21 = scalar_select %p369_p10, %s9966_s13, 1  ;;  %9270 = vmatprep.subr.bf16.mxu0 %v9881_v25  ;;  %v629_v41 = vsub.f32 %v10041_v34, %v628_v39  ;;  %v636_v47 = vsub.f32 %v10043_v35, %v635_v44  ;;  %v529_v34 = vld [vmem:[%s10962_s4 + $0x8] sm:$0xff]  ;;  %vm7431_vm7 = vcmask 523264  }
  0x1a   : > { %v622_v40 = vsub.f32 %v10039_v33, %v621_v38  ;;  %v643_v48 = vsub.f32 %v10045_v36, %v642_v45  ;;  %v10065_v54 = vpack.c.bf16 %v628_v39, %v621_v38  ;;  %v10067_v55 = vpack.c.bf16 %v642_v45, %v635_v44  ;;  %v528_v33 = vld [vmem:[%s10962_s4] sm:$0xff]  ;;  %v530_v38 = vld [vmem:[%s10962_s4 + $0x10] sm:$0xff]  ;;  %v531_v39 = vld [vmem:[%s10962_s4 + $0x18] sm:$0xff] }
  0x1b   : > { %s8179_s22 = sshll.u32 %s9995_s21, 3  ;;  %v630_v43 = vand.u32 4294901760, %v629_v41  ;;  %v637_v49 = vand.u32 4294901760, %v636_v47  ;;  %s8180_s29 = sshll.u32 %s9995_s21, 1  ;;  %v1028_v35 = vand.u32 4294901760, %v528_v33  ;;  %v1031_v36 = vand.u32 4294901760, %v529_v34 }
  0x1c   : > { %s372_s25 = scalar_lea.vmem %s10971_s0, %s8179_s22  ;;  %9272 = vmatpush3.bf16.msra.mxu0 %v10048_v37  ;;  %v623_v42 = vand.u32 4294901760, %v622_v40  ;;  %v644_v50 = vand.u32 4294901760, %v643_v48  ;;  %s10104_s28 = scalar_lea.vmem %s10966_s8, %s8180_s29  ;;  %v1037_v44 = vand.u32 4294901760, %v531_v39 }
  0x1d   : > { %v386_v0 = vld [vmem:[%s372_s25] sm:$0xff]  ;;  %9273 = vmatprep.subr.bf16.mxu0 %v9881_v25  ;;  %s10099_s25 = scalar_lea.vmem %s10959_s1, %s8180_s29  ;;  %s9884_s29 = smov 32   ;;  %v1108_v41 = vsub.f32 %v528_v33, %v1028_v35  ;;  %v8191_v33 = vld [vmem:[%s10961_s3 + $0x9] ss:$0 sm:$0xff] }
  0x1e   : > { %v474_v1 = vsel %vm473_vm0, %v386_v0, 0.0  ;;  %v9274_v46 = vpack.c.bf16 %v630_v43, %v623_v42  ;;  %v9277_v51 = vpack.c.bf16 %v644_v50, %v637_v49  ;;  %v1115_v42 = vsub.f32 %v529_v34, %v1031_v36  ;;  %s9889_s22 = smov 80   ;;  %s8209_s26 = sshll.u32 %s9995_s21, 5 }
  0x1f   : > { %475 = vadd.xlane.f32.xlu0 %v474_v1  ;;  %v1034_v43 = vand.u32 4294901760, %v530_v38  ;;  %v1129_v47 = vsub.f32 %v531_v39, %v1037_v44  ;;  %v1109_v48 = vand.u32 4294901760, %v1108_v41  ;;  %s10270_s23 = scalar_lea.vmem %s10960_s2, %s8209_s26 }
  0x20   : > { %v1116_v49 = vand.u32 4294901760, %v1115_v42 }
  0x21   : > { %v9307_v56 = vpack.c.bf16 %v1037_v44, %v1034_v43 }
  0xac   : > { %v476_v2 = vpop.xlane.xlu0 %475 }
  0xad   : > { %v478_v3 = vmul.f32 0.03125, %v476_v2  ;;  %v411_v2 = vsub.s32 0, %v10073_v62 }
  0xaf   : > { %v479_v4 = vsub.f32 %v386_v0, %v478_v3  ;;  %v425_v3 = vsub.f32 7.0, %v10076_v63 }
  0xb1   : > { %v480_v5 = vmul.f32 %v479_v4, %v479_v4 }
  0xb3   : > { %v481_v6 = vsel %vm473_vm0, %v480_v5, 0.0  ;;  %v417_v5 = vadd.f32 1.0, %v10076_v63 }
  0xb4   : > { %482 = vadd.xlane.f32.xlu0 %v481_v6 }
 0x141   : > { %v483_v7 = vpop.xlane.xlu0 %482 }
 0x142   : > { %v484_v8 = vmul.f32 0.03125, %v483_v7 }
 0x144   : > { %v485_v9 = vadd.f32 1e-05, %v484_v8 }
 0x146   : > { %9747 = vrsqrt.f32 %v485_v9 }
 0x147   : > { %9749 = vpow2.f32 %v396_v57 }
 0x150   : > { %v9748_v10 = vpop.eup %9747 }
 0x151   : > { %v487_v12 = vmul.f32 %v9748_v10, %v479_v4  ;;  %v9750_v0 = vpop.eup %9749  ;;  %v8187_v10 = vld [vmem:[%s10961_s3 + $0x2] ss:$0 sm:$0xff] }
 0x152   : > { %v10078_v1 = vsub.f32 0.0, %v9750_v0 }
 0x153   : > { %v492_v14 = vmul.f32 %v8185_v11, %v487_v12 }
 0x154   : > { %v416_v4 = vsub.f32 0.0, %v10078_v1  ;;  %v10085_v6 = vrot.slane %v10078_v1, %v411_v2 }
 0x155   : > { %v10009_v15 = vadd.f32 %v8186_v13, %v492_v14  ;;  %v8188_v13 = vld [vmem:[%s10961_s3 + $0x3] ss:$0 sm:$0xff] }
 0x156   : > { %v421_v7 = vrot.slane %v416_v4, %v411_v2  ;;  %v426_v8 = vmul.f32 %v425_v3, %v10085_v6 }
 0x157   : > { %v498_v16 = vsel %vm473_vm0, %v10009_v15, 0.0 }
 0x158   : > { %499 = vadd.xlane.f32.xlu1 %v498_v16  ;;  %v422_v12 = vmul.f32 %v421_v7, %v417_v5  ;;  %v9316_v7 = vpack.c.bf16 %v1115_v42, %v1108_v41 }
 0x15a   : > { %v423_v16 = vmul.f32 1.442695, %v422_v12 }
 0x1e5   : > { %v500_v17 = vpop.xlane.xlu1 %499 }
 0x1e6   : > { %v501_v18 = vmul.f32 0.03125, %v500_v17  ;;  %v427_v17 = vmul.f32 1.442695, %v426_v8 }
 0x1e8   : > { %v10014_v19 = vsub.f32 %v10009_v15, %v501_v18 }
 0x1ea   : > { %v503_v20 = vmul.f32 %v10014_v19, %v10014_v19 }
 0x1ec   : > { %v504_v21 = vsel %vm473_vm0, %v503_v20, 0.0 }
 0x1ed   : > { %505 = vadd.xlane.f32.xlu1 %v504_v21 }
 0x27a   : > { %v506_v58 = vpop.xlane.xlu1 %505 }
 0x27b   : > { %v507_v59 = vmul.f32 0.03125, %v506_v58 }
 0x27d   : > { %v508_v61 = vadd.f32 1e-05, %v507_v59 }
 0x27f   : > { %9751 = vrsqrt.f32 %v508_v61 }
 0x280   : > { %9753 = vpow2.f32 %v423_v16 }
 0x281   : > { %9755 = vpow2.f32 %v427_v17 }
 0x289   : > { %v9752_v9 = vpop.eup %9751 }
 0x28a   : > { %v510_v11 = vmul.f32 %v9752_v9, %v10014_v19  ;;  %v8189_v19 = vld [vmem:[%s10099_s25] ss:$0 sm:$0xff]  ;;  %v9754_v26 = vpop.eup %9753  ;;  %v9328_v9 = vpack.c.bf16 %v1116_v49, %v1109_v48 }
 0x28b   : > { %1523 = vrot.lane.b32.xlu0 %v9754_v26, %s9884_s29  ;;  %v9756_v28 = vpop.eup %9755 }
 0x28c   : > { %v515_v14 = vmul.f32 %v8187_v10, %v510_v11  ;;  %v413_v11 = vmul.f32 %v10085_v6, %v10076_v63 }
 0x28e   : > { %v520_v18 = vadd.f32 %v8188_v13, %v515_v14  ;;  %v414_v12 = vmul.f32 1.442695, %v413_v11 }
 0x28f   : > { %2932 = vrot.lane.b32.xlu0 %v9756_v28, %s9884_s29  ;;  %s9885_s29 = smov 64  }
 0x290   : > { %7990 = vst.msk [vmem:[%s10104_s28 - $0x7] sm:$0x80] %vm7989_vm2, %v520_v18  ;;  %v522_v20 = vrot.slane %v520_v18, 7  ;;  %v1025_v40 = vsel %vm473_vm0, %v520_v18, 0  ;;  %9757 = vpow2.f32 %v414_v12 }
 0x291   : > { %v10146_v45 = vand.u32 4294901760, %v1025_v40 }
 0x292   : > { %v527_v21 = vsel %vm402_vm3, %v8189_v19, %v522_v20 }
 0x293   : > { %v537_v22 = vsel %vm473_vm0, %v527_v21, 0  ;;  %v1097_v50 = vsub.f32 %v1025_v40, %v10146_v45 }
 0x294   : > { %v608_v23 = vand.u32 4294901760, %v537_v22 }
 0x296   : > { %v609_v24 = vsub.f32 %v537_v22, %v608_v23 }
 0x298   : > { %v610_v27 = vand.u32 4294901760, %v609_v24 }
 0x29a   : > { %v611_v29 = vsub.f32 %v609_v24, %v610_v27  ;;  %v9758_v18 = vpop.eup %9757 }
 0x29c   : > { %v612_v31 = vand.u32 4294901760, %v611_v29 }
 0x29e   : > { %8550 = vmatmul.mubr.f32.vlgmr.msra.gmra.mrb[0].mxu0 %v612_v31 }
 0x29f   : > { %9275 = vmatpush3.bf16.msra.mxu0 %v9274_v46  ;;  %8560 = vmatprep.mubr.msk.f32.mxu0 %vm9882_vm1, %v9883_v30  ;;  %v1122_v46 = vsub.f32 %v530_v38, %v1034_v43 }
 0x2a0   : > { %9276 = vmatprep.subr.bf16.mxu0 %v9881_v25 }
 0x2a1   : > { %v9319_v8 = vpack.c.bf16 %v1129_v47, %v1122_v46 }
 0x2a3   : > { %9278 = vmatpush3.bf16.msra.mxu0 %v9277_v51  ;;  %v9304_v51 = vpack.c.bf16 %v1031_v36, %v1028_v35 }
 0x2a4   : > { %9279 = vmatprep.subr.bf16.mxu0 %v9881_v25 }
 0x2a6   : > { %8561 = vmatmul.mubr.f32.vlgmr.msra.gmra.mrb[0].mxu0 %v608_v23 }
 0x2a7   : > { %9281 = vmatpush3.bf16.msra.mxu0 %v9280_v52  ;;  %8571 = vmatprep.mubr.msk.f32.mxu0 %vm9882_vm1, %v9883_v30  ;;  %v1110_v52 = vsub.f32 %v1108_v41, %v1109_v48 }
 0x2a8   : > { %9282 = vmatprep.subr.bf16.mxu0 %v9881_v25 }
 0x2a9   : > { %v1111_v57 = vand.u32 4294901760, %v1110_v52 }
 0x2ab   : > { %9284 = vmatpush3.bf16.msra.mxu0 %v9283_v53  ;;  %v1117_v53 = vsub.f32 %v1115_v42, %v1116_v49 }
 0x2ac   : > { %9285 = vmatprep.subr.bf16.mxu0 %v9881_v25 }
 0x2ad   : > { %v1118_v58 = vand.u32 4294901760, %v1117_v53 }
 0x2ae   : > { %8572 = vmatmul.mubr.f32.vlgmr.msra.gmra.mrb[0].mxu0 %v609_v24 }
 0x2af   : > { %9287 = vmatpush3.bf16.msra.mxu0 %v10037_v32  ;;  %8582 = vmatprep.mubr.msk.f32.mxu0 %vm9882_vm1, %v9883_v30  ;;  %v9310_v0 = vpack.c.bf16 %v1118_v58, %v1111_v57  ;;  %v1520_v57 = vld [vmem:[%s10270_s23] sm:$0xff]  ;;  %v1521_v58 = vld [vmem:[%s10270_s23 + $0x8] sm:$0xff] }
 0x2b0   : > { %9288 = vmatprep.subr.bf16.mxu0 %v9881_v25 }
 0x2b3   : > { %9290 = vmatpush3.bf16.msra.mxu0 %v10048_v37 }
 0x2b4   : > { %9291 = vmatprep.subr.bf16.mxu0 %v9881_v25 }
 0x2b6   : > { %8583 = vmatmul.mubr.f32.vlgmr.msra.gmra.mrb[0].mxu0 %v610_v27 }
 0x2b7   : > { %9293 = vmatpush3.bf16.msra.mxu0 %v10065_v54  ;;  %8593 = vmatprep.mubr.msk.f32.mxu0 %vm9882_vm1, %v9883_v30  ;;  %v1123_v54 = vand.u32 4294901760, %v1122_v46 }
 0x2b8   : > { %9294 = vmatprep.subr.bf16.mxu0 %v9881_v25 }
 0x2b9   : > { %v1124_v59 = vsub.f32 %v1122_v46, %v1123_v54 }
 0x2bb   : > { %9296 = vmatpush3.bf16.msra.mxu0 %v10067_v55  ;;  %v1130_v55 = vand.u32 4294901760, %v1129_v47  ;;  %v1125_v2 = vand.u32 4294901760, %v1124_v59  ;;  %v1998_v59 = vand.u32 4294901760, %v1520_v57 }
 0x2bc   : > { %9297 = vmatprep.subr.bf16.mxu0 %v9881_v25 }
 0x2bd   : > { %v1131_v61 = vsub.f32 %v1129_v47, %v1130_v55  ;;  %v9331_v10 = vpack.c.bf16 %v1130_v55, %v1123_v54 }
 0x2be   : > { %8594 = vmatmul.mubr.f32.vlgmr.msra.gmra.mrb[0].mxu0 %v608_v23 }
 0x2bf   : > { %9299 = vmatpush3.bf16.msra.mxu0 %v10037_v32  ;;  %8604 = vmatprep.mubr.msk.f32.mxu0 %vm9882_vm1, %v9883_v30  ;;  %v1098_v32 = vand.u32 4294901760, %v1097_v50  ;;  %v1132_v3 = vand.u32 4294901760, %v1131_v61  ;;  %v2001_v61 = vand.u32 4294901760, %v1521_v58 }
 0x2c0   : > { %9300 = vmatprep.subr.bf16.mxu0 %v9881_v25 }
 0x2c1   : > { %v9313_v5 = vpack.c.bf16 %v1132_v3, %v1125_v2 }
 0x2c3   : > { %9302 = vmatpush3.bf16.msra.mxu0 %v10048_v37  ;;  %v1099_v37 = vsub.f32 %v1097_v50, %v1098_v32 }
 0x2c4   : > { %9303 = vmatprep.subr.bf16.mxu0 %v9881_v25 }
 0x2c5   : > { %v1100_v4 = vand.u32 4294901760, %v1099_v37  ;;  %v2076_v37 = vsub.f32 %v1520_v57, %v1998_v59 }
 0x2c6   : > { %8605 = vmatmul.mubr.f32.vlgmr.msra.gmra.mrb[0].mxu0 %v608_v23 }
 0x2c7   : > { %9305 = vmatpush3.bf16.msra.mxu0 %v9304_v51  ;;  %8615 = vmatprep.mubr.msk.f32.mxu0 %vm9882_vm1, %v9883_v30  ;;  %v2077_v2 = vand.u32 4294901760, %v2076_v37 }
 0x2c8   : > { %9306 = vmatprep.subr.bf16.mxu0 %v9881_v25 }
 0x2cb   : > { %9308 = vmatpush3.bf16.msra.mxu0 %v9307_v56 }
 0x2cc   : > { %9309 = vmatprep.subr.bf16.mxu0 %v9881_v25 }
 0x2ce   : > { %8616 = vmatmul.mubr.f32.vlgmr.msra.gmra.mrb[0].mxu0 %v1100_v4  ;;  %v2078_v4 = vsub.f32 %v2076_v37, %v2077_v2 }
 0x2cf   : > { %9311 = vmatpush3.bf16.msra.mxu0 %v9310_v0  ;;  %8626 = vmatprep.mubr.msk.f32.mxu0 %vm9882_vm1, %v9883_v30  ;;  %v2083_v0 = vsub.f32 %v1521_v58, %v2001_v61 }
 0x2d0   : > { %9312 = vmatprep.subr.bf16.mxu0 %v9881_v25 }
 0x2d1   : > { %v2084_v3 = vand.u32 4294901760, %v2083_v0 }
 0x2d3   : > { %9314 = vmatpush3.bf16.msra.mxu0 %v9313_v5  ;;  %v2085_v5 = vsub.f32 %v2083_v0, %v2084_v3 }
 0x2d4   : > { %9315 = vmatprep.subr.bf16.mxu0 %v9881_v25 }
 0x2d6   : > { %8627 = vmatmul.mubr.f32.vlgmr.msra.gmra.mrb[0].mxu0 %v10146_v45 }
 0x2d7   : > { %9317 = vmatpush3.bf16.msra.mxu0 %v9316_v7  ;;  %8637 = vmatprep.mubr.msk.f32.mxu0 %vm9882_vm1, %v9883_v30  ;;  %v9340_v7 = vpack.c.bf16 %v2001_v61, %v1998_v59 }
 0x2d8   : > { %9318 = vmatprep.subr.bf16.mxu0 %v9881_v25 }
 0x2db   : > { %9320 = vmatpush3.bf16.msra.mxu0 %v9319_v8  ;;  %v2079_v8 = vand.u32 4294901760, %v2078_v4 }
 0x2dc   : > { %9321 = vmatprep.subr.bf16.mxu0 %v9881_v25 }
 0x2de   : > { %8638 = vmatmul.mubr.f32.vlgmr.msra.gmra.mrb[0].mxu0 %v1097_v50 }
 0x2df   : > { %9323 = vmatpush3.bf16.msra.mxu0 %v9304_v51  ;;  %8648 = vmatprep.mubr.msk.f32.mxu0 %vm9882_vm1, %v9883_v30 }
 0x2e0   : > { %9324 = vmatprep.subr.bf16.mxu0 %v9881_v25 }
 0x2e3   : > { %9326 = vmatpush3.bf16.msra.mxu0 %v9307_v56 }
 0x2e4   : > { %9327 = vmatprep.subr.bf16.mxu0 %v9881_v25 }
 0x2e6   : > { %8649 = vmatmul.mubr.f32.vlgmr.msra.gmra.mrb[0].mxu0 %v1098_v32 }
 0x2e7   : > { %9329 = vmatpush3.bf16.msra.mxu0 %v9328_v9  ;;  %8659 = vmatprep.mubr.msk.f32.mxu0 %vm9882_vm1, %v9883_v30  ;;  %v2086_v9 = vand.u32 4294901760, %v2085_v5 }
 0x2e8   : > { %9330 = vmatprep.subr.bf16.mxu0 %v9881_v25 }
 0x2eb   : > { %9332 = vmatpush3.bf16.msra.mxu0 %v9331_v10  ;;  %v9343_v10 = vpack.c.bf16 %v2086_v9, %v2079_v8  ;;  %v8194_v9 = vld [vmem:[%s10270_s23 + $0x10] sm:$0xff] }
 0x2ec   : > { %9333 = vmatprep.subr.bf16.mxu0 %v9881_v25 }
 0x2ee   : > { %8660 = vmatmul.mubr.f32.vlgmr.msra.gmra.mrb[0].mxu0 %v10146_v45 }
 0x2ef   : > { %9335 = vmatpush3.bf16.msra.mxu0 %v9304_v51  ;;  %8670 = vmatprep.mubr.msk.f32.mxu0 %vm9882_vm1, %v9883_v30 }
 0x2f0   : > { %9336 = vmatprep.subr.bf16.mxu0 %v9881_v25 }
 0x2f3   : > { %9338 = vmatpush3.bf16.msra.mxu0 %v9307_v56 }
 0x2f4   : > { %8805 = vmatprep.subr.mxu0 %v9883_v30 }
 0x2f6   : > { %8671 = vmatmul.mubr.f32.vlgmr.msra.gmra.mrb[0].mxu0 %v10146_v45 }
 0x2f7   : > { %8807 = vmatprep.mubr.msk.f32.mxu0 %vm9882_vm1, %v9883_v30 }
 0x2fd   : > { %v1524_v13 = vpop.permute.xlu0 %1523 }
 0x301   : > { %v2933_v6 = vpop.permute.xlu0 %2932 }
 0x3c9   : > { %v10186_v14 = vpop.f32.mrb[0].mxu0 }
 0x3ca   : > { %2461 = vrot.lane.b32.xlu0 %v10186_v14, %s9885_s29  ;;  %v8672_v16 = vpop.f32.mrb[1].mxu0  ;;  %v1526_v17 = vmul.f32 %v1524_v13, %v10186_v14  ;;  %v1519_v63 = vmul.f32 %v9758_v18, %v10186_v14  ;;  %v10200_v19 = vmul.f32 %v2933_v6, %v10186_v14  ;;  %v1987_v38 = vmul.f32 %v8191_v33, %v10186_v14 }
 0x3cb   : > { %v9346_v13 = vpack.c.bf16 %v2083_v0, %v2076_v37  ;;  %v9352_v16 = vpack.c.bf16 %v2084_v3, %v2077_v2  ;;  %v405_v6 = vand.u32 127, %v400_v60 }
 0x3cc   : > { %1528 = vrot.lane.b32.xlu1 %v1526_v17, %s9886_s14  ;;  %v1532_v20 = vsel %vm1530_vm4, %v1519_v63, 0 }
 0x3cd   : > { %v10205_v21 = vand.u32 4294901760, %v1532_v20  ;;  %vm406_vm5 = vcmp.lt.s32.totalorder %v405_v6, %v10073_v62 }
 0x3ce   : > { %4448 = vrot.lane.b32.xlu0 %v10186_v14, %s9887_s16 }
 0x3cf   : > { %v10208_v22 = vsub.f32 %v1532_v20, %v10205_v21  ;;  %v8184_v20 = vsel %vm406_vm5, 1.0, %v9883_v30 }
 0x3d0   : > { %3521 = vrot.lane.b32.xlu1 %v1519_v63, %s9888_s17 }
 0x3d1   : > { %v10211_v23 = vand.u32 4294901760, %v10208_v22 }
 0x3d2   : > { %1989 = vrot.lane.b32.xlu0 %v10186_v14, %s9886_s14 }
 0x3d3   : > { %v1605_v28 = vsub.f32 %v10208_v22, %v10211_v23 }
 0x3d4   : > { %3523 = vrot.lane.b32.xlu1 %v1526_v17, %s9889_s22 }
 0x3d5   : > { %v10229_v39 = vand.u32 4294901760, %v1605_v28 }
 0x3d8   : > { %2937 = vrot.lane.b32.xlu1 %v10200_v19, %s9886_s14 }
 0x43c   : > { %v10213_v24 = vpop.permute.xlu0 %2461 }
 0x43d   : > { %v10341_v17 = vand.u32 4294901760, %v10213_v24 }
 0x43e   : > { %v1529_v26 = vpop.permute.xlu1 %1528 }
 0x43f   : > { %v1534_v27 = vsel %vm1530_vm4, %v1529_v26, 0 }
 0x440   : > { %v10218_v29 = vand.u32 4294901760, %v1534_v27  ;;  %v10220_v31 = vpop.permute.xlu0 %4448 }
 0x441   : > { %v10315_v11 = vand.u32 4294901760, %v10220_v31 }
 0x442   : > { %v1614_v34 = vsub.f32 %v1534_v27, %v10218_v29  ;;  %8674 = vmatpush3.xpose.msra.mxu1 %v10218_v29  ;;  %v3522_v35 = vpop.permute.xlu1 %3521 }
 0x443   : > { %v3525_v36 = vsel %vm1530_vm4, %v3522_v35, 0  ;;  %8678 = vmatprep.subr.mxu1 %v9883_v30 }
 0x444   : > { %v1615_v40 = vand.u32 4294901760, %v1614_v34  ;;  %v10232_v41 = vand.u32 4294901760, %v3525_v36  ;;  %v1990_v42 = vpop.permute.xlu0 %1989 }
 0x445   : > { %v10234_v43 = vmul.f32 %v1990_v42, %v1987_v38  ;;  %8676 = vmatmul.mubr.f32.vlgmr.msra.gmra.mrb[0].mxu1 %v10229_v39 }
 0x446   : > { %v1616_v44 = vsub.f32 %v1614_v34, %v1615_v40  ;;  %v10238_v45 = vsub.f32 %v3525_v36, %v10232_v41  ;;  %v3524_v46 = vpop.permute.xlu1 %3523  ;;  %8680 = vmatprep.mubr.msk.f32.mxu1 %vm9882_vm1, %v9883_v30 }
 0x447   : > { %v3527_v47 = vsel %vm1530_vm4, %v3524_v46, 0  ;;  %3977 = vrot.lane.b32.xlu0 %v10234_v43, %s9888_s17  ;;  %v1993_v12 = vsel %vm1530_vm4, %v10234_v43, 0.0 }
 0x448   : > { %v1617_v48 = vand.u32 4294901760, %v1616_v44  ;;  %v10246_v49 = vand.u32 4294901760, %v10238_v45  ;;  %v10248_v50 = vand.u32 4294901760, %v3527_v47 }
 0x44a   : > { %v3607_v51 = vsub.f32 %v3527_v47, %v10248_v50  ;;  %8679 = vmatpush3.xpose.msra.mxu1 %v1617_v48  ;;  %8806 = vmatpush3.xpose.msra.mxu0 %v10248_v50  ;;  %v2938_v52 = vpop.permute.xlu1 %2937  ;;  %v3598_v53 = vsub.f32 %v10238_v45, %v10246_v49 }
 0x44b   : > { %2940 = vxpose.xlu1.b32.start.end [1/1] (short) (narrow) %v2938_v52, 16  ;;  %8683 = vmatprep.subr.mxu1 %v9883_v30 }
 0x44c   : > { %v3608_v54 = vand.u32 4294901760, %v3607_v51  ;;  %v10255_v55 = vand.u32 4294901760, %v3598_v53  ;;  %8810 = vmatprep.subr.mxu0 %v9883_v30 }
 0x44d   : > { %8681 = vmatmul.mubr.f32.vlgmr.msra.gmra.mrb[0].mxu1 %v10205_v21 }
 0x44e   : > { %v3609_v32 = vsub.f32 %v3607_v51, %v3608_v54  ;;  %8684 = vmatpush3.xpose.msra.mxu1 %v1614_v34  ;;  %8808 = vmatmul.mubr.f32.vlgmr.msra.gmra.mrb[2].mxu0 %v10255_v55 }
 0x44f   : > { %8685 = vmatprep.mubr.msk.f32.mxu1 %vm9882_vm1, %v9883_v30  ;;  %8688 = vmatprep.subr.mxu1 %v9883_v30 }
 0x450   : > { %v3610_v56 = vand.u32 4294901760, %v3609_v32  ;;  %8812 = vmatprep.mubr.msk.f32.mxu0 %vm9882_vm1, %v9883_v30 }
 0x452   : > { %8811 = vmatpush3.xpose.msra.mxu0 %v3610_v56 }
 0x453   : > { %8815 = vmatprep.subr.mxu0 %v9883_v30 }
 0x455   : > { %8686 = vmatmul.mubr.f32.vlgmr.msra.gmra.mrb[0].mxu1 %v10208_v22 }
 0x456   : > { %8689 = vmatpush3.xpose.msra.mxu1 %v10218_v29  ;;  %8813 = vmatmul.mubr.f32.vlgmr.msra.gmra.mrb[2].mxu0 %v10232_v41 }
 0x457   : > { %8816 = vmatpush3.xpose.msra.mxu0 %v3607_v51  ;;  %8690 = vmatprep.mubr.msk.f32.mxu1 %vm9882_vm1, %v9883_v30 }
 0x458   : > { %8693 = vmatprep.subr.mxu1 %v9883_v30  ;;  %8817 = vmatprep.mubr.msk.f32.mxu0 %vm9882_vm1, %v9883_v30 }
 0x459   : > { %8820 = vmatprep.subr.mxu0 %v9883_v30 }
 0x45d   : > { %8691 = vmatmul.mubr.f32.vlgmr.msra.gmra.mrb[0].mxu1 %v10211_v23 }
 0x45e   : > { %8694 = vmatpush3.xpose.msra.mxu1 %v1615_v40  ;;  %8818 = vmatmul.mubr.f32.vlgmr.msra.gmra.mrb[2].mxu0 %v10238_v45 }
 0x45f   : > { %8821 = vmatpush3.xpose.msra.mxu0 %v10248_v50  ;;  %8695 = vmatprep.mubr.msk.f32.mxu1 %vm9882_vm1, %v9883_v30 }
 0x460   : > { %8698 = vmatprep.subr.mxu1 %v9883_v30  ;;  %8822 = vmatprep.mubr.msk.f32.mxu0 %vm9882_vm1, %v9883_v30 }
 0x461   : > { %8825 = vmatprep.subr.mxu0 %v9883_v30 }
 0x465   : > { %8696 = vmatmul.mubr.f32.vlgmr.msra.gmra.mrb[0].mxu1 %v10205_v21 }
 0x466   : > { %8699 = vmatpush3.xpose.msra.mxu1 %v10218_v29  ;;  %8823 = vmatmul.mubr.f32.vlgmr.msra.gmra.mrb[2].mxu0 %v10246_v49 }
 0x467   : > { %8826 = vmatpush3.xpose.msra.mxu0 %v3608_v54  ;;  %8700 = vmatprep.mubr.msk.f32.mxu1 %vm9882_vm1, %v9883_v30 }
 0x468   : > { %9339 = vmatprep.subr.bf16.mxu1 %v9881_v25  ;;  %8827 = vmatprep.mubr.msk.f32.mxu0 %vm9882_vm1, %v9883_v30 }
 0x469   : > { %8830 = vmatprep.subr.mxu0 %v9883_v30 }
 0x46d   : > { %8701 = vmatmul.mubr.f32.vlgmr.msra.gmra.mrb[0].mxu1 %v10205_v21 }
 0x46e   : > { %9341 = vmatpush3.bf16.msra.mxu1 %v9340_v7  ;;  %8828 = vmatmul.mubr.f32.vlgmr.msra.gmra.mrb[2].mxu0 %v10232_v41 }
 0x46f   : > { %8831 = vmatpush3.xpose.msra.mxu0 %v10248_v50  ;;  %8707 = vmatprep.mubr.msk.f32.mxu1 %vm9882_vm1, %v9883_v30 }
 0x470   : > { %9342 = vmatprep.subr.bf16.mxu1 %v9881_v25  ;;  %8832 = vmatprep.mubr.msk.f32.mxu0 %vm9882_vm1, %v9883_v30 }
 0x471   : > { %8708 = vmatmul.mubr.f32.vlgmr.msra.gmra.mrb[2].mxu1 %v10229_v39  ;;  %8877 = vmatprep.subr.mxu0 %v9883_v30 }
 0x472   : > { %9344 = vmatpush3.bf16.msra.mxu1 %v9343_v10  ;;  %8714 = vmatprep.mubr.msk.f32.mxu1 %vm9882_vm1, %v9883_v30  ;;  %v8195_v10 = vld [vmem:[%s10270_s23 + $0x18] sm:$0xff] }
 0x473   : > { %9345 = vmatprep.subr.bf16.mxu1 %v9881_v25 }
 0x476   : > { %8833 = vmatmul.mubr.f32.vlgmr.msra.gmra.mrb[2].mxu0 %v10232_v41  ;;  %1994 = vadd.xlane.f32.xlu1 %v1993_v12  ;;  %v3985_v12 = vand.u32 4294901760, %v8194_v9 }
 0x477   : > { %8878 = vmatpush3.msra.mxu0 %v10315_v11  ;;  %8879 = vmatprep.mubr.msk.f32.mxu0 %vm9882_vm1, %v9883_v30 }
 0x478   : > { %8882 = vmatprep.subr.mxu0 %v9883_v30 }
 0x479   : > { %8715 = vmatmul.mubr.f32.vlgmr.msra.gmra.mrb[2].mxu1 %v10205_v21 }
 0x47a   : > { %9347 = vmatpush3.bf16.msra.mxu1 %v9346_v13  ;;  %8721 = vmatprep.mubr.msk.f32.mxu1 %vm9882_vm1, %v9883_v30  ;;  %v3988_v13 = vand.u32 4294901760, %v8195_v10 }
 0x47b   : > { %9348 = vmatprep.subr.bf16.mxu1 %v9881_v25 }
 0x481   : > { %8722 = vmatmul.mubr.f32.vlgmr.msra.gmra.mrb[2].mxu1 %v10208_v22 }
 0x482   : > { %9350 = vmatpush3.bf16.msra.mxu1 %v9340_v7  ;;  %8728 = vmatprep.mubr.msk.f32.mxu1 %vm9882_vm1, %v9883_v30 }
 0x483   : > { %9351 = vmatprep.subr.bf16.mxu1 %v9881_v25 }
 0x489   : > { %8729 = vmatmul.mubr.f32.vlgmr.msra.gmra.mrb[2].mxu1 %v10211_v23 }
 0x48a   : > { %9353 = vmatpush3.bf16.msra.mxu1 %v9352_v16  ;;  %8735 = vmatprep.mubr.msk.f32.mxu1 %vm9882_vm1, %v9883_v30  ;;  %v4063_v16 = vsub.f32 %v8194_v9, %v3985_v12 }
 0x48b   : > { %9354 = vmatprep.subr.bf16.mxu1 %v9881_v25 }
 0x491   : > { %8736 = vmatmul.mubr.f32.vlgmr.msra.gmra.mrb[2].mxu1 %v10205_v21 }
 0x492   : > { %9356 = vmatpush3.bf16.msra.mxu1 %v9340_v7  ;;  %8742 = vmatprep.mubr.msk.f32.mxu1 %vm9882_vm1, %v9883_v30 }
 0x493   : > { %8745 = vmatprep.subr.mxu1 %v9883_v30 }
 0x499   : > { %8743 = vmatmul.mubr.f32.vlgmr.msra.gmra.mrb[2].mxu1 %v10205_v21  ;;  %v10354_v21 = vsub.f32 %v10213_v24, %v10341_v17  ;;  %v10367_v24 = vsub.f32 %v10220_v31, %v10315_v11 }
 0x49a   : > { %8746 = vmatpush3.msra.mxu1 %v10341_v17  ;;  %8747 = vmatprep.mubr.msk.f32.mxu1 %vm9882_vm1, %v9883_v30 }
 0x49b   : > { %8750 = vmatprep.subr.mxu1 %v9883_v30  ;;  %v10360_v29 = vand.u32 4294901760, %v10354_v21  ;;  %v10375_v46 = vand.u32 4294901760, %v10367_v24 }
 0x49d   : > { %v2548_v35 = vsub.f32 %v10354_v21, %v10360_v29  ;;  %v4534_v48 = vsub.f32 %v10367_v24, %v10375_v46 }
 0x49f   : > { %v10372_v44 = vand.u32 4294901760, %v2548_v35  ;;  %v10385_v52 = vand.u32 4294901760, %v4534_v48 }
 0x4b9   : > { %v3978_v18 = vpop.permute.xlu0 %3977 }
 0x4ba   : > { %v3980_v63 = vsel %vm1530_vm4, %v3978_v18, 0.0  ;;  %v4070_v18 = vsub.f32 %v8195_v10, %v3988_v13 }
 0x4bb   : > { %3981 = vadd.xlane.f32.xlu0 %v3980_v63  ;;  %v4064_v63 = vand.u32 4294901760, %v4063_v16 }
 0x4bc   : > { %v4071_v6 = vand.u32 4294901760, %v4070_v18 }
 0x4cb   : > { %v2956_v53 = vpop.trf.xlu1 }
 0x4cc   : > { %v2973_v54 = vsel %vm2464_vm6, %v2956_v53, 0 }
 0x4cd   : > { %v10405_v56 = vand.u32 4294901760, %v2973_v54 }
 0x4cf   : > { %v2957_v32 = vpop.trf.xlu1  ;;  %v3045_v59 = vsub.f32 %v2973_v54, %v10405_v56 }
 0x4d0   : > { %v2976_v57 = vsel %vm2464_vm6, %v2957_v32, 0 }
 0x4d1   : > { %v10409_v58 = vand.u32 4294901760, %v2976_v57  ;;  %v3046_v0 = vand.u32 4294901760, %v3045_v59 }
 0x4d3   : > { %v3055_v61 = vsub.f32 %v2976_v57, %v10409_v58  ;;  %v3047_v4 = vsub.f32 %v3045_v59, %v3046_v0 }
 0x4d5   : > { %v3056_v3 = vand.u32 4294901760, %v3055_v61  ;;  %v3048_v7 = vand.u32 4294901760, %v3047_v4 }
 0x4d7   : > { %v3057_v5 = vsub.f32 %v3055_v61, %v3056_v3 }
 0x4d9   : > { %v3058_v8 = vand.u32 4294901760, %v3057_v5 }
 0x540   : > { %v1978_v22 = vpop.f32.mrb[0].mxu1 }
 0x541   : > { %v1982_v23 = vmul.f32 %v8184_v20, %v1978_v22  ;;  %v8702_v26 = vpop.f32.mrb[1].mxu1  ;;  %v4072_v22 = vsub.f32 %v4070_v18, %v4071_v6 }
 0x543   : > { %v2466_v27 = vsel %vm2464_vm6, %v1982_v23, 0  ;;  %v4073_v26 = vand.u32 4294901760, %v4072_v22 }
 0x544   : > { %v10357_v28 = vand.u32 4294901760, %v2466_v27 }
 0x546   : > { %v2535_v60 = vsub.f32 %v2466_v27, %v10357_v28 }
 0x548   : > { %v2536_v33 = vand.u32 4294901760, %v2535_v60 }
 0x549   : > { %v3971_v34 = vpop.f32.mrb[2].mxu0 }
 0x54a   : > { %v3975_v36 = vmul.f32 %v8184_v20, %v3971_v34  ;;  %v8834_v38 = vpop.f32.mrb[3].mxu0  ;;  %v2537_v39 = vsub.f32 %v2535_v60, %v2536_v33  ;;  %v4065_v20 = vsub.f32 %v4063_v16, %v4064_v63 }
 0x54c   : > { %v4452_v40 = vsel %vm2464_vm6, %v3975_v36, 0  ;;  %v2538_v42 = vand.u32 4294901760, %v2537_v39  ;;  %v4066_v23 = vand.u32 4294901760, %v4065_v20  ;;  %v5477_v20 = vld [vmem:[%s10964_s6 + $0x18] sm:$0xff] }
 0x54d   : > { %v10370_v43 = vand.u32 4294901760, %v4452_v40 }
 0x54e   : > { %8748 = vmatmul.mubr.f32.vlgmr.msra.gmra.mrb[4].mxu1 %v2538_v42  ;;  %v9361_v27 = vpack.c.bf16 %v4073_v26, %v4066_v23  ;;  %v5487_v23 = vand.u32 4294901760, %v5477_v20 }
 0x54f   : > { %v4521_v47 = vsub.f32 %v4452_v40, %v10370_v43  ;;  %8751 = vmatpush3.msra.mxu1 %v10372_v44  ;;  %8752 = vmatprep.mubr.msk.f32.mxu1 %vm9882_vm1, %v9883_v30 }
 0x550   : > { %8755 = vmatprep.subr.mxu1 %v9883_v30 }
 0x551   : > { %v4522_v31 = vand.u32 4294901760, %v4521_v47 }
 0x553   : > { %v4523_v50 = vsub.f32 %v4521_v47, %v4522_v31 }
 0x555   : > { %v4524_v51 = vand.u32 4294901760, %v4523_v50 }
 0x556   : > { %8753 = vmatmul.mubr.f32.vlgmr.msra.gmra.mrb[4].mxu1 %v10357_v28 }
 0x557   : > { %8756 = vmatpush3.msra.mxu1 %v10354_v21  ;;  %8880 = vmatmul.mubr.f32.vlgmr.msra.gmra.mrb[4].mxu0 %v4524_v51 }
 0x558   : > { %8883 = vmatpush3.msra.mxu0 %v10385_v52  ;;  %8757 = vmatprep.mubr.msk.f32.mxu1 %vm9882_vm1, %v9883_v30 }
 0x559   : > { %8760 = vmatprep.subr.mxu1 %v9883_v30  ;;  %8884 = vmatprep.mubr.msk.f32.mxu0 %vm9882_vm1, %v9883_v30 }
 0x55a   : > { %8887 = vmatprep.subr.mxu0 %v9883_v30 }
 0x55e   : > { %8758 = vmatmul.mubr.f32.vlgmr.msra.gmra.mrb[4].mxu1 %v2535_v60 }
 0x55f   : > { %8761 = vmatpush3.msra.mxu1 %v10341_v17  ;;  %8885 = vmatmul.mubr.f32.vlgmr.msra.gmra.mrb[4].mxu0 %v10370_v43 }
 0x560   : > { %8888 = vmatpush3.msra.mxu0 %v10367_v24  ;;  %8762 = vmatprep.mubr.msk.f32.mxu1 %vm9882_vm1, %v9883_v30 }
 0x561   : > { %8765 = vmatprep.subr.mxu1 %v9883_v30  ;;  %8889 = vmatprep.mubr.msk.f32.mxu0 %vm9882_vm1, %v9883_v30 }
 0x562   : > { %8892 = vmatprep.subr.mxu0 %v9883_v30 }
 0x566   : > { %8763 = vmatmul.mubr.f32.vlgmr.msra.gmra.mrb[4].mxu1 %v2536_v33 }
 0x567   : > { %8766 = vmatpush3.msra.mxu1 %v10360_v29  ;;  %8890 = vmatmul.mubr.f32.vlgmr.msra.gmra.mrb[4].mxu0 %v4521_v47 }
 0x568   : > { %8893 = vmatpush3.msra.mxu0 %v10315_v11  ;;  %8767 = vmatprep.mubr.msk.f32.mxu1 %vm9882_vm1, %v9883_v30 }
 0x569   : > { %8770 = vmatprep.subr.mxu1 %v9883_v30  ;;  %8894 = vmatprep.mubr.msk.f32.mxu0 %vm9882_vm1, %v9883_v30 }
 0x56a   : > { %8897 = vmatprep.subr.mxu0 %v9883_v30 }
 0x56c   : > { %v10420_v37 = vpop.f32.mrb[2].mxu1 }
 0x56d   : > { %v8744_v2 = vpop.f32.mrb[3].mxu1 }
 0x56e   : > { %8768 = vmatmul.mubr.f32.vlgmr.msra.gmra.mrb[4].mxu1 %v10357_v28 }
 0x56f   : > { %8771 = vmatpush3.msra.mxu1 %v10341_v17  ;;  %8895 = vmatmul.mubr.f32.vlgmr.msra.gmra.mrb[4].mxu0 %v4522_v31 }
 0x570   : > { %8775 = vmatprep.subr.mxu1 %v10341_v17  ;;  %8898 = vmatpush3.msra.mxu0 %v10375_v46 }
 0x571   : > { %8772 = vmatprep.mubr.msk.f32.mxu1 %vm9882_vm1, %v9883_v30  ;;  %8899 = vmatprep.mubr.msk.f32.mxu0 %vm9882_vm1, %v9883_v30 }
 0x572   : > { %8902 = vmatprep.subr.mxu0 %v9883_v30 }
 0x576   : > { %8773 = vmatmul.mubr.f32.vlgmr.msra.gmra.mrb[4].mxu1 %v10357_v28 }
 0x577   : > { %8776 = vmatpush3.msra.mxu1 %v10341_v17  ;;  %8777 = vmatprep.mubr.f32.mxu1 %v3048_v7 }
 0x578   : > { %8780 = vmatprep.subr.mxu1 %v10372_v44  ;;  %8900 = vmatmul.mubr.f32.vlgmr.msra.gmra.mrb[4].mxu0 %v10370_v43 }
 0x579   : > { %8903 = vmatpush3.msra.mxu0 %v10315_v11  ;;  %8904 = vmatprep.mubr.msk.f32.mxu0 %vm9882_vm1, %v9883_v30 }
 0x57a   : > { %8778 = vmatmul.mubr.f32.vlgmr.msra.gmra.mrb[6].mxu1 %v3058_v8  ;;  %9375 = vmatprep.subr.bf16.mxu0 %v9881_v25 }
 0x57b   : > { %8781 = vmatpush3.msra.mxu1 %v10372_v44  ;;  %8782 = vmatprep.mubr.f32.mxu1 %v10405_v56 }
 0x57c   : > { %8785 = vmatprep.subr.mxu1 %v10354_v21 }
 0x580   : > { %8905 = vmatmul.mubr.f32.vlgmr.msra.gmra.mrb[4].mxu0 %v10370_v43  ;;  %v1995_v43 = vpop.xlane.xlu1 %1994 }
 0x581   : > { %8941 = vmatprep.mubr.msk.f32.mxu0 %vm9882_vm1, %v9883_v30  ;;  %v1996_v47 = vmul.f32 %v1995_v43, %v10186_v14 }
 0x582   : > { %8783 = vmatmul.mubr.f32.vlgmr.msra.gmra.mrb[6].mxu1 %v10409_v58 }
 0x583   : > { %8786 = vmatpush3.msra.mxu1 %v10354_v21  ;;  %8787 = vmatprep.mubr.f32.mxu1 %v3045_v59  ;;  %v9358_v21 = vpack.c.bf16 %v3988_v13, %v3985_v12  ;;  %v8193_v12 = vld [vmem:[%s10961_s3 + $0x7] ss:$0 sm:$0xff] }
 0x584   : > { %8790 = vmatprep.subr.mxu1 %v10341_v17 }
 0x58a   : > { %8788 = vmatmul.mubr.f32.vlgmr.msra.gmra.mrb[6].mxu1 %v3055_v61 }
 0x58b   : > { %8791 = vmatpush3.msra.mxu1 %v10341_v17  ;;  %8792 = vmatprep.mubr.f32.mxu1 %v3046_v0 }
 0x58c   : > { %8795 = vmatprep.subr.mxu1 %v10360_v29 }
 0x592   : > { %8793 = vmatmul.mubr.f32.vlgmr.msra.gmra.mrb[6].mxu1 %v3056_v3 }
 0x593   : > { %8796 = vmatpush3.msra.mxu1 %v10360_v29  ;;  %8797 = vmatprep.mubr.f32.mxu1 %v10405_v56 }
 0x594   : > { %8800 = vmatprep.subr.mxu1 %v10341_v17 }
 0x59a   : > { %8798 = vmatmul.mubr.f32.vlgmr.msra.gmra.mrb[6].mxu1 %v10409_v58 }
 0x59b   : > { %8801 = vmatpush3.msra.mxu1 %v10341_v17  ;;  %8802 = vmatprep.mubr.f32.mxu1 %v10405_v56  ;;  %v9364_v17 = vpack.c.bf16 %v4070_v18, %v4063_v16  ;;  %v8192_v56 = vld [vmem:[%s10961_s3 + $0x6] ss:$0 sm:$0xff] }
 0x59c   : > { %9357 = vmatprep.subr.bf16.mxu1 %v9881_v25 }
 0x5a2   : > { %8803 = vmatmul.mubr.f32.vlgmr.msra.gmra.mrb[6].mxu1 %v10409_v58 }
 0x5a3   : > { %9359 = vmatpush3.bf16.msra.mxu1 %v9358_v21  ;;  %8839 = vmatprep.mubr.msk.f32.mxu1 %vm9882_vm1, %v9883_v30 }
 0x5a4   : > { %9360 = vmatprep.subr.bf16.mxu1 %v9881_v25 }
 0x5a6   : > { %8840 = vmatmul.mubr.f32.vlgmr.msra.gmra.mrb[8].mxu1 %v10255_v55  ;;  %v9370_v55 = vpack.c.bf16 %v4071_v6, %v4064_v63  ;;  %v5476_v6 = vld [vmem:[%s10964_s6 + $0x10] sm:$0xff] }
 0x5a7   : > { %9362 = vmatpush3.bf16.msra.mxu1 %v9361_v27  ;;  %8846 = vmatprep.mubr.msk.f32.mxu1 %vm9882_vm1, %v9883_v30 }
 0x5a8   : > { %9363 = vmatprep.subr.bf16.mxu1 %v9881_v25 }
 0x5ae   : > { %8847 = vmatmul.mubr.f32.vlgmr.msra.gmra.mrb[8].mxu1 %v10232_v41 }
 0x5af   : > { %9365 = vmatpush3.bf16.msra.mxu1 %v9364_v17  ;;  %8853 = vmatprep.mubr.msk.f32.mxu1 %vm9882_vm1, %v9883_v30 }
 0x5b0   : > { %9366 = vmatprep.subr.bf16.mxu1 %v9881_v25 }
 0x5b6   : > { %8854 = vmatmul.mubr.f32.vlgmr.msra.gmra.mrb[8].mxu1 %v10238_v45 }
 0x5b7   : > { %9368 = vmatpush3.bf16.msra.mxu1 %v9358_v21  ;;  %8860 = vmatprep.mubr.msk.f32.mxu1 %vm9882_vm1, %v9883_v30 }
 0x5b8   : > { %9369 = vmatprep.subr.bf16.mxu1 %v9881_v25 }
 0x5be   : > { %8861 = vmatmul.mubr.f32.vlgmr.msra.gmra.mrb[8].mxu1 %v10246_v49 }
 0x5bf   : > { %9371 = vmatpush3.bf16.msra.mxu1 %v9370_v55  ;;  %8867 = vmatprep.mubr.msk.f32.mxu1 %vm9882_vm1, %v9883_v30 }
 0x5c0   : > { %9372 = vmatprep.subr.bf16.mxu1 %v9881_v25 }
 0x5c6   : > { %8868 = vmatmul.mubr.f32.vlgmr.msra.gmra.mrb[8].mxu1 %v10232_v41 }
 0x5c7   : > { %9374 = vmatpush3.bf16.msra.mxu1 %v9358_v21  ;;  %8874 = vmatprep.mubr.msk.f32.mxu1 %vm9882_vm1, %v9883_v30  ;;  %v5484_v21 = vand.u32 4294901760, %v5476_v6 }
 0x5c8   : > { %8907 = vmatprep.subr.mxu1 %v10315_v11 }
 0x5c9   : > { %v10524_v27 = vsub.f32 %v5476_v6, %v5484_v21 }
 0x5cb   : > { %v5563_v55 = vand.u32 4294901760, %v10524_v27 }
 0x5ce   : > { %8875 = vmatmul.mubr.f32.vlgmr.msra.gmra.mrb[8].mxu1 %v10232_v41  ;;  %v3982_v41 = vpop.xlane.xlu0 %3981 }
 0x5cf   : > { %8908 = vmatpush3.msra.mxu1 %v10315_v11  ;;  %v3983_v38 = vmul.f32 %v3982_v41, %v10186_v14 }
 0x5d0   : > { %8912 = vmatprep.subr.mxu1 %v10385_v52 }
 0x649   : > { %v2910_v45 = vpop.f32.mrb[4].mxu1 }
 0x64a   : > { %v8774_v49 = vpop.f32.mrb[5].mxu1 }
 0x64b   : > { %v5564_v49 = vsub.f32 %v10524_v27, %v5563_v55 }
 0x653   : > { %v4896_v28 = vpop.f32.mrb[4].mxu0 }
 0x654   : > { %v8906_v29 = vpop.f32.mrb[5].mxu0 }
 0x675   : > { %v10486_v60 = vpop.f32.mrb[6].mxu1 }
 0x676   : > { %v10488_v33 = vpop.f32.mrb[7].mxu1 }
 0x6a1   : > { %v4439_v34 = vpop.f32.mrb[8].mxu1 }
 0x6a2   : > { %v8876_v35 = vpop.f32.mrb[9].mxu1  ;;  %4444 = vrot.lane.b32.xlu0 %v4439_v34, %s9889_s22 }
 0x6a3   : > { %v5565_v35 = vand.u32 4294901760, %v5564_v49 }
 0x6a6   : > { %4901 = vrot.lane.b32.xlu0 %v4896_v28, %s9889_s22 }
 0x6aa   : > { %2457 = vrot.lane.b32.xlu0 %v10420_v37, %s9885_s29 }
 0x6ae   : > { %2915 = vrot.lane.b32.xlu0 %v2910_v45, %s9885_s29 }
 0x714   : > { %v4445_v36 = vpop.permute.xlu0 %4444 }
 0x715   : > { %v4447_v39 = vadd.f32 %v4445_v36, %v3983_v38 }
 0x718   : > { %v4902_v40 = vpop.permute.xlu0 %4901 }
 0x719   : > { %v4904_v42 = vadd.f32 %v4902_v40, %v4447_v39  ;;  %v10532_v40 = vpack.c.bf16 %v5487_v23, %v5484_v21 }
 0x71b   : > { %5453 = vrot.lane.b32.xlu0 %v4904_v42, %s9887_s16  ;;  %9377 = vmatpush3.bf16.msra.mxu0 %v10532_v40 }
 0x71c   : > { %v2458_v44 = vpop.permute.xlu0 %2457  ;;  %9381 = vmatprep.subr.bf16.mxu0 %v9881_v25 }
 0x71d   : > { %v2460_v31 = vadd.f32 %v2458_v44, %v1996_v47 }
 0x720   : > { %v2916_v48 = vpop.permute.xlu0 %2915 }
 0x721   : > { %v2918_v50 = vadd.f32 %v2916_v48, %v2460_v31 }
 0x723   : > { %3472 = vrot.lane.b32.xlu0 %v2918_v50, %s9885_s29 }
 0x78d   : > { %v5454_v51 = vpop.permute.xlu0 %5453 }
 0x78e   : > { %v5456_v53 = vsel %vm1530_vm4, %v5454_v51, 0.0 }
 0x78f   : > { %5457 = vadd.xlane.f32.xlu1 %v5456_v53 }
 0x795   : > { %v3473_v54 = vpop.permute.xlu0 %3472 }
 0x796   : > { %v3475_v32 = vsel %vm1530_vm4, %v3473_v54, 0.0 }
 0x797   : > { %3476 = vadd.xlane.f32.xlu0 %v3475_v32 }
 0x7ad   : > { %4917 = vrot.lane.b32.xlu0 %v10200_v19, %s9889_s22  ;;  %v8190_v19 = vmul.f32 -1.442695, %v10186_v14  ;;  %s8210_s22 = sshll.u32 %s9966_s13, 9 }
 0x7ae   : > { %s10877_s27 = scalar_lea.hbm %s10967_s9, %s8210_s22 }
 0x7af   : > { %9759 = vpow2.f32 %v8190_v19 }
 0x7b1   : > { %3498 = vrot.lane.b32.xlu0 %v8192_v56, %s9885_s29 }
 0x7b9   : > { %v9760_v9 = vpop.eup %9759 }
 0x7ba   : > { %v1515_v10 = vadd.f32 1.0, %v9760_v9 }
 0x7bc   : > { %9761 = vrcp.f32 %v1515_v10 }
 0x7c6   : > { %v9762_v13 = vpop.eup %9761 }
 0x7c7   : > { %v1518_v16 = vmul.f32 %v9762_v13, %v10186_v14  ;;  %v10526_v14 = vsub.f32 %v5477_v20, %v5487_v23 }
 0x7c9   : > { %v5570_v45 = vand.u32 4294901760, %v10526_v14  ;;  %v9382_v51 = vpack.c.bf16 %v10526_v14, %v10524_v27 }
 0x7cb   : > { %v5571_v28 = vsub.f32 %v10526_v14, %v5570_v45  ;;  %v10539_v32 = vpack.c.bf16 %v5570_v45, %v5563_v55 }
 0x7cd   : > { %v5572_v41 = vand.u32 4294901760, %v5571_v28 }
 0x7cf   : > { %v9379_v38 = vpack.c.bf16 %v5572_v41, %v5565_v35 }
 0x81c   : > { %v5458_v57 = vpop.xlane.xlu1 %5457 }
 0x81d   : > { %v5459_v58 = vmul.f32 0.0625, %v5458_v57 }
 0x81f   : > { %v5460_v59 = vsub.f32 %v4904_v42, %v5459_v58 }
 0x821   : > { %v5461_v61 = vmul.f32 %v5460_v59, %v5460_v59 }
 0x823   : > { %5463 = vrot.lane.b32.xlu1 %v5461_v61, %s9887_s16 }
 0x824   : > { %v3477_v37 = vpop.xlane.xlu0 %3476 }
 0x825   : > { %v3479_v0 = vmul.f32 0.0625, %v3477_v37 }
 0x827   : > { %v3480_v2 = vsub.f32 %v2918_v50, %v3479_v0 }
 0x828   : > { %v4918_v18 = vpop.permute.xlu0 %4917 }
 0x829   : > { %v3481_v3 = vmul.f32 %v3480_v2, %v3480_v2 }
 0x82b   : > { %3483 = vrot.lane.b32.xlu1 %v3481_v3, %s9885_s29 }
 0x82c   : > { %v3499_v17 = vpop.permute.xlu0 %3498 }
 0x895   : > { %v5464_v4 = vpop.permute.xlu1 %5463 }
 0x896   : > { %v5466_v5 = vsel %vm1530_vm4, %v5464_v4, 0.0 }
 0x897   : > { %5467 = vadd.xlane.f32.xlu1 %v5466_v5 }
 0x89d   : > { %v3484_v7 = vpop.permute.xlu1 %3483 }
 0x89e   : > { %v3486_v8 = vsel %vm1530_vm4, %v3484_v7, 0.0 }
 0x89f   : > { %3487 = vadd.xlane.f32.xlu0 %v3486_v8 }
 0x8a8   : > { %3507 = vrot.lane.b32.xlu1 %v8193_v12, %s9885_s29 }
 0x8b5   : > { %3512 = vrot.lane.b32.xlu0 %v1518_v16, %s9886_s14 }
 0x8d3   : > { %4920 = vxpose.xlu0.b32.start.end [1/1] (short) (narrow) %v4918_v18, 16 }
 0x924   : > { %v5468_v63 = vpop.xlane.xlu1 %5467 }
 0x925   : > { %v5469_v22 = vmul.f32 0.0625, %v5468_v63 }
 0x927   : > { %v5470_v26 = vadd.f32 0.00064, %v5469_v22 }
 0x928   : > { %v3508_v43 = vpop.permute.xlu1 %3507 }
 0x929   : > { %9763 = vrsqrt.f32 %v5470_v26 }
 0x92c   : > { %v3488_v29 = vpop.xlane.xlu0 %3487 }
 0x92d   : > { %v3489_v34 = vmul.f32 0.0625, %v3488_v29 }
 0x92f   : > { %v3490_v36 = vadd.f32 0.00064, %v3489_v34 }
 0x930   : > { %v3513_v31 = vpop.permute.xlu0 %3512 }
 0x931   : > { %9765 = vrsqrt.f32 %v3490_v36 }
 0x933   : > { %v9764_v39 = vpop.eup %9763 }
 0x934   : > { %v5472_v42 = vmul.f32 %v9764_v39, %v5460_v59 }
 0x936   : > { %v5473_v44 = vmul.f32 %v5472_v42, %v3499_v17 }
 0x938   : > { %v5474_v47 = vadd.f32 %v5473_v44, %v3508_v43 }
 0x93a   : > { %v5475_v48 = vmul.f32 %v5474_v47, %v3513_v31 }
 0x93b   : > { %v9766_v50 = vpop.eup %9765 }
 0x93c   : > { %v3492_v53 = vmul.f32 %v9766_v50, %v3480_v2  ;;  %5479 = vrot.lane.b32.xlu1 %v5475_v48, %s9887_s16 }
 0x93e   : > { %v3501_v54 = vmul.f32 %v3499_v17, %v3492_v53 }
 0x940   : > { %v3510_v56 = vadd.f32 %v3508_v43, %v3501_v54 }
 0x942   : > { %v3515_v57 = vmul.f32 %v3513_v31, %v3510_v56 }
 0x944   : > { %5943 = vrot.lane.b32.xlu1 %v3515_v57, %s9885_s29 }
 0x953   : > { %v4936_v58 = vpop.trf.xlu0 }
 0x954   : > { %v4953_v59 = vsel %vm2464_vm6, %v4936_v58, 0 }
 0x955   : > { %v5024_v61 = vand.u32 4294901760, %v4953_v59 }
 0x957   : > { %v5025_v37 = vsub.f32 %v4953_v59, %v5024_v61  ;;  %v4937_v0 = vpop.trf.xlu0 }
 0x958   : > { %v4956_v3 = vsel %vm2464_vm6, %v4937_v0, 0 }
 0x959   : > { %v5026_v19 = vand.u32 4294901760, %v5025_v37  ;;  %v5034_v4 = vand.u32 4294901760, %v4956_v3 }
 0x95b   : > { %v5035_v2 = vsub.f32 %v4956_v3, %v5034_v4  ;;  %v5027_v5 = vsub.f32 %v5025_v37, %v5026_v19 }
 0x95d   : > { %v5036_v7 = vand.u32 4294901760, %v5035_v2  ;;  %v5028_v8 = vand.u32 4294901760, %v5027_v5 }
 0x95f   : > { %v5037_v9 = vsub.f32 %v5035_v2, %v5036_v7  ;;  %8909 = vmatprep.mubr.f32.mxu1 %v5028_v8 }
 0x961   : > { %v5038_v10 = vand.u32 4294901760, %v5037_v9 }
 0x963   : > { %8910 = vmatmul.mubr.f32.vlgmr.msra.gmra.mrb[10].mxu1 %v5038_v10 }
 0x964   : > { %8913 = vmatpush3.msra.mxu1 %v10385_v52  ;;  %8914 = vmatprep.mubr.f32.mxu1 %v5024_v61 }
 0x965   : > { %8917 = vmatprep.subr.mxu1 %v10367_v24 }
 0x96b   : > { %8915 = vmatmul.mubr.f32.vlgmr.msra.gmra.mrb[10].mxu1 %v5034_v4 }
 0x96c   : > { %8918 = vmatpush3.msra.mxu1 %v10367_v24  ;;  %8919 = vmatprep.mubr.f32.mxu1 %v5025_v37  ;;  %v3516_v24 = vld [vmem:[%s10964_s6] sm:$0xff] }
 0x96d   : > { %8922 = vmatprep.subr.mxu1 %v10315_v11  ;;  %v5948_v52 = vand.u32 4294901760, %v3516_v24 }
 0x96f   : > { %v6026_v12 = vsub.f32 %v3516_v24, %v5948_v52 }
 0x971   : > { %v6027_v16 = vand.u32 4294901760, %v6026_v12 }
 0x973   : > { %8920 = vmatmul.mubr.f32.vlgmr.msra.gmra.mrb[10].mxu1 %v5035_v2  ;;  %v6028_v20 = vsub.f32 %v6026_v12, %v6027_v16 }
 0x974   : > { %8923 = vmatpush3.msra.mxu1 %v10315_v11  ;;  %8924 = vmatprep.mubr.f32.mxu1 %v5026_v19 }
 0x975   : > { %8927 = vmatprep.subr.mxu1 %v10375_v46  ;;  %v6029_v26 = vand.u32 4294901760, %v6028_v20 }
 0x97b   : > { %8925 = vmatmul.mubr.f32.vlgmr.msra.gmra.mrb[10].mxu1 %v5036_v7 }
 0x97c   : > { %8928 = vmatpush3.msra.mxu1 %v10375_v46  ;;  %8929 = vmatprep.mubr.f32.mxu1 %v5024_v61  ;;  %v3517_v46 = vld [vmem:[%s10964_s6 + $0x8] sm:$0xff] }
 0x97d   : > { %8932 = vmatprep.subr.mxu1 %v10315_v11 }
 0x983   : > { %8930 = vmatmul.mubr.f32.vlgmr.msra.gmra.mrb[10].mxu1 %v5034_v4 }
 0x984   : > { %8933 = vmatpush3.msra.mxu1 %v10315_v11  ;;  %8934 = vmatprep.mubr.f32.mxu1 %v5024_v61  ;;  %v5951_v11 = vand.u32 4294901760, %v3517_v46 }
 0x985   : > { %9378 = vmatprep.subr.bf16.mxu1 %v9881_v25 }
 0x986   : > { %v6033_v13 = vsub.f32 %v3517_v46, %v5951_v11  ;;  %v9394_v36 = vpack.c.bf16 %v5951_v11, %v5948_v52 }
 0x988   : > { %v6034_v18 = vand.u32 4294901760, %v6033_v13  ;;  %v9400_v14 = vpack.c.bf16 %v6033_v13, %v6026_v12 }
 0x98a   : > { %v6035_v22 = vsub.f32 %v6033_v13, %v6034_v18 }
 0x98b   : > { %8935 = vmatmul.mubr.f32.vlgmr.msra.gmra.mrb[10].mxu1 %v5034_v4 }
 0x98c   : > { %9380 = vmatpush3.bf16.msra.mxu1 %v9379_v38  ;;  %8948 = vmatprep.mubr.msk.f32.mxu1 %vm9882_vm1, %v9883_v30  ;;  %v6036_v17 = vand.u32 4294901760, %v6035_v22 }
 0x98d   : > { %9384 = vmatprep.subr.bf16.mxu1 %v9881_v25 }
 0x98e   : > { %v9397_v29 = vpack.c.bf16 %v6036_v17, %v6029_v26 }
 0x9ae   : > { %v5480_v63 = vpop.permute.xlu1 %5479 }
 0x9af   : > { %v5481_v6 = vsel %vm1530_vm4, %v5480_v63, 0 }
 0x9b0   : > { %v5550_v21 = vand.u32 4294901760, %v5481_v6 }
 0x9b2   : > { %v5551_v23 = vsub.f32 %v5481_v6, %v5550_v21  ;;  %8949 = vmatmul.mubr.f32.vlgmr.msra.gmra.mrb[12].mxu1 %v5550_v21 }
 0x9b3   : > { %9386 = vmatpush3.bf16.msra.mxu1 %v10532_v40  ;;  %8962 = vmatprep.mubr.msk.f32.mxu1 %vm9882_vm1, %v9883_v30 }
 0x9b4   : > { %v5552_v55 = vand.u32 4294901760, %v5551_v23  ;;  %9390 = vmatprep.subr.bf16.mxu1 %v9881_v25 }
 0x9b6   : > { %v5553_v45 = vsub.f32 %v5551_v23, %v5552_v55  ;;  %8963 = vmatmul.mubr.f32.vlgmr.msra.gmra.mrb[14].mxu1 %v5552_v55  ;;  %v5944_v49 = vpop.permute.xlu1 %5943 }
 0x9b7   : > { %v5945_v28 = vsel %vm1530_vm4, %v5944_v49, 0  ;;  %9392 = vmatpush3.bf16.msra.mxu1 %v10532_v40  ;;  %8976 = vmatprep.mubr.msk.f32.mxu1 %vm9882_vm1, %v9883_v30  ;;  %v9406_v40 = vpack.c.bf16 %v6034_v18, %v6027_v16 }
 0x9b8   : > { %v5554_v34 = vand.u32 4294901760, %v5553_v45  ;;  %v6014_v35 = vand.u32 4294901760, %v5945_v28  ;;  %9396 = vmatprep.subr.bf16.mxu1 %v9881_v25 }
 0x9ba   : > { %v6015_v41 = vsub.f32 %v5945_v28, %v6014_v35  ;;  %8942 = vmatmul.mubr.f32.vlgmr.msra.gmra.mrb[6].mxu0 %v5554_v34  ;;  %8977 = vmatmul.mubr.f32.vlgmr.msra.gmra.mrb[16].mxu1 %v5550_v21  ;;  %v6443_v34 = vld [vmem:[%s10963_s5 + $0x30] sm:$0xff] }
 0x9bb   : > { %9383 = vmatpush3.bf16.msra.mxu0 %v9382_v51  ;;  %9398 = vmatpush3.bf16.msra.mxu1 %v9397_v29  ;;  %v6441_v29 = vld [vmem:[%s10963_s5 + $0x20] sm:$0xff] }
 0x9bc   : > { %v6016_v38 = vand.u32 4294901760, %v6015_v41  ;;  %8955 = vmatprep.mubr.msk.f32.mxu0 %vm9882_vm1, %v9883_v30  ;;  %8990 = vmatprep.mubr.msk.f32.mxu1 %vm9882_vm1, %v9883_v30 }
 0x9bd   : > { %9387 = vmatprep.subr.bf16.mxu0 %v9881_v25  ;;  %9402 = vmatprep.subr.bf16.mxu1 %v9881_v25 }
 0x9be   : > { %8956 = vmatmul.mubr.f32.vlgmr.msra.gmra.mrb[8].mxu0 %v5551_v23  ;;  %8991 = vmatmul.mubr.f32.vlgmr.msra.gmra.mrb[18].mxu1 %v6014_v35  ;;  %v6017_v27 = vsub.f32 %v6015_v41, %v6016_v38 }
 0x9bf   : > { %9389 = vmatpush3.bf16.msra.mxu0 %v10539_v32  ;;  %9404 = vmatpush3.bf16.msra.mxu1 %v9394_v36 }
 0x9c0   : > { %8969 = vmatprep.mubr.msk.f32.mxu0 %vm9882_vm1, %v9883_v30  ;;  %9004 = vmatprep.mubr.msk.f32.mxu1 %vm9882_vm1, %v9883_v30  ;;  %v6018_v39 = vand.u32 4294901760, %v6017_v27 }
 0x9c1   : > { %9393 = vmatprep.subr.bf16.mxu0 %v9881_v25  ;;  %9408 = vmatprep.subr.bf16.mxu1 %v9881_v25 }
 0x9c2   : > { %8970 = vmatmul.mubr.f32.vlgmr.msra.gmra.mrb[10].mxu0 %v5550_v21  ;;  %9005 = vmatmul.mubr.f32.vlgmr.msra.gmra.mrb[20].mxu1 %v6016_v38  ;;  %v9890_v21 = vmov 0   ;;  %v6455_v38 = vand.u32 4294901760, %v6443_v34 }
 0x9c3   : > { %9395 = vmatpush3.bf16.msra.mxu0 %v9394_v36  ;;  %9410 = vmatpush3.bf16.msra.mxu1 %v9394_v36  ;;  %v6444_v36 = vld [vmem:[%s10963_s5 + $0x38] sm:$0xff] }
 0x9c4   : > { %8983 = vmatprep.mubr.msk.f32.mxu0 %vm9882_vm1, %v9883_v30  ;;  %9018 = vmatprep.mubr.msk.f32.mxu1 %vm9882_vm1, %v9883_v30 }
 0x9c5   : > { %9399 = vmatprep.subr.bf16.mxu0 %v9881_v25  ;;  %9483 = vmatprep.subr.bf16.mxu1 %v9881_v25 }
 0x9c6   : > { %8984 = vmatmul.mubr.f32.vlgmr.msra.gmra.mrb[12].mxu0 %v6018_v39  ;;  %9019 = vmatmul.mubr.f32.vlgmr.msra.gmra.mrb[22].mxu1 %v6014_v35 }
 0x9c7   : > { %9401 = vmatpush3.bf16.msra.mxu0 %v9400_v14  ;;  %8997 = vmatprep.mubr.msk.f32.mxu0 %vm9882_vm1, %v9883_v30  ;;  %v6458_v14 = vand.u32 4294901760, %v6444_v36 }
 0x9c8   : > { %9405 = vmatprep.subr.bf16.mxu0 %v9881_v25  ;;  %9169 = vmatprep.mubr.msk.f32.mxu1 %vm9882_vm1, %v9883_v30 }
 0x9c9   : > { %9745 = vset.pattern.permute.xlu0 %v9890_v21 }
 0x9ca   : > { %8998 = vmatmul.mubr.f32.vlgmr.msra.gmra.mrb[14].mxu0 %v6015_v41 }
 0x9cb   : > { %9407 = vmatpush3.bf16.msra.mxu0 %v9406_v40  ;;  %9011 = vmatprep.mubr.msk.f32.mxu0 %vm9882_vm1, %v9883_v30 }
 0x9cc   : > { %9411 = vmatprep.subr.bf16.mxu0 %v9881_v25 }
 0x9ce   : > { %9012 = vmatmul.mubr.f32.vlgmr.msra.gmra.mrb[16].mxu0 %v6014_v35  ;;  %v6449_v35 = vand.u32 4294901760, %v6441_v29 }
 0x9cf   : > { %9029 = vmatprep.mubr.msk.f32.mxu0 %vm9882_vm1, %v9883_v30 }
 0x9d0   : > { %v10633_v40 = vsub.f32 %v6441_v29, %v6449_v35  ;;  %v9781_v29 = vld [vmem:[%s10270_s23 + $0x8] sm:$0xff] }
 0xa5e   : > { %v10605_v42 = vpop.f32.mrb[10].mxu1 }
 0xa5f   : > { %v10607_v43 = vpop.f32.mrb[11].mxu1 }
 0xa85   : > { %v5637_v44 = vpop.f32.mrb[12].mxu1 }
 0xa86   : > { %v8950_v47 = vpop.f32.mrb[13].mxu1 }
 0xa87   : > { %v10637_v47 = vsub.f32 %v6443_v34, %v6455_v38  ;;  %v6438_v34 = vld [vmem:[%s10963_s5 + $0x8] sm:$0xff] }
 0xa89   : > { %v5788_v31 = vpop.f32.mrb[14].mxu1 }
 0xa8a   : > { %v8964_v48 = vpop.f32.mrb[15].mxu1 }
 0xa8b   : > { %v10642_v48 = vpack.c.bf16 %v6458_v14, %v6455_v38  ;;  %v6440_v38 = vld [vmem:[%s10963_s5 + $0x18] sm:$0xff] }
 0xa8d   : > { %v5556_v50 = vpop.f32.mrb[6].mxu0  ;;  %v5938_v51 = vpop.f32.mrb[16].mxu1 }
 0xa8e   : > { %v5638_v53 = vadd.f32 %v5637_v44, %v5556_v50  ;;  %v8943_v54 = vpop.f32.mrb[7].mxu0  ;;  %v8978_v32 = vpop.f32.mrb[17].mxu1  ;;  %v6530_v50 = vand.u32 4294901760, %v10633_v40 }
 0xa91   : > { %v5713_v56 = vpop.f32.mrb[8].mxu0  ;;  %v6101_v57 = vpop.f32.mrb[18].mxu1 }
 0xa92   : > { %v5714_v58 = vadd.f32 %v5713_v56, %v5638_v53  ;;  %v8957_v59 = vpop.f32.mrb[9].mxu0  ;;  %v8992_v61 = vpop.f32.mrb[19].mxu1  ;;  %v6531_v53 = vsub.f32 %v10633_v40, %v6530_v50 }
 0xa94   : > { %v5789_v37 = vadd.f32 %v5788_v31, %v5714_v58  ;;  %v10639_v31 = vsub.f32 %v6444_v36, %v6458_v14  ;;  %v6532_v32 = vand.u32 4294901760, %v6531_v53  ;;  %v6439_v36 = vld [vmem:[%s10963_s5 + $0x10] sm:$0xff] }
 0xa95   : > { %v5865_v0 = vpop.f32.mrb[10].mxu0  ;;  %v6252_v3 = vpop.f32.mrb[20].mxu1 }
 0xa96   : > { %v5866_v19 = vadd.f32 %v5865_v0, %v5789_v37  ;;  %v8971_v4 = vpop.f32.mrb[11].mxu0  ;;  %v9006_v2 = vpop.f32.mrb[21].mxu1  ;;  %v6551_v58 = vand.u32 4294901760, %v10639_v31 }
 0xa98   : > { %v5939_v5 = vadd.f32 %v5938_v51, %v5866_v19  ;;  %v6552_v0 = vsub.f32 %v10639_v31, %v6551_v58 }
 0xa99   : > { %v6020_v7 = vpop.f32.mrb[12].mxu0  ;;  %v6402_v8 = vpop.f32.mrb[22].mxu1 }
 0xa9a   : > { %v6021_v9 = vadd.f32 %v6020_v7, %v5939_v5  ;;  %v8985_v10 = vpop.f32.mrb[13].mxu0  ;;  %v9020_v24 = vpop.f32.mrb[23].mxu1  ;;  %v6553_v19 = vand.u32 4294901760, %v6552_v0  ;;  %v9427_v5 = vpack.c.bf16 %v10639_v31, %v10637_v47 }
 0xa9c   : > { %v6102_v46 = vadd.f32 %v6101_v57, %v6021_v9  ;;  %v6544_v57 = vand.u32 4294901760, %v10637_v47 }
 0xa9d   : > { %v6177_v52 = vpop.f32.mrb[14].mxu0 }
 0xa9e   : > { %v6178_v11 = vadd.f32 %v6177_v52, %v6102_v46  ;;  %v8999_v12 = vpop.f32.mrb[15].mxu0  ;;  %v6545_v37 = vsub.f32 %v10637_v47, %v6544_v57  ;;  %v8198_v52 = vld [vmem:[%s10961_s3 + $0x4] ss:$0 sm:$0xff]  ;;  %v6946_v47 = vand.u32 4294901760, %v6440_v38 }
 0xa9f   : > { %v8199_v12 = vld [vmem:[%s10961_s3 + $0x5] ss:$0 sm:$0xff] }
 0xaa0   : > { %v6253_v13 = vadd.f32 %v6252_v3, %v6178_v11  ;;  %v6546_v3 = vand.u32 4294901760, %v6545_v37 }
 0xaa1   : > { %v6329_v16 = vpop.f32.mrb[16].mxu0 }
 0xaa2   : > { %v6330_v18 = vadd.f32 %v6329_v16, %v6253_v13  ;;  %v9013_v63 = vpop.f32.mrb[17].mxu0  ;;  %v9421_v4 = vpack.c.bf16 %v6553_v19, %v6546_v3 }
 0xaa4   : > { %v6403_v6 = vadd.f32 %v6402_v8, %v6330_v18  ;;  %v9439_v8 = vpack.c.bf16 %v6551_v58, %v6544_v57  ;;  %v8200_v18 = vld [vmem:[%s10099_s25 + $0x1] ss:$0 sm:$0xff]  ;;  %s10679_s25 = sand.u32 1, %s9871_s10  }
 0xaa5   : > { %s8002_s17 = scalar_lea.sflag [#allocation5], %s10679_s25 }
 0xaa6   : > { %v10610_v20 = vadd.f32 %v6403_v6, %v10009_v15 }
 0xaa8   : > { %v6407_v22 = vsel %vm473_vm0, %v10610_v20, 0.0 }
 0xaa9   : > { %6408 = vadd.xlane.f32.xlu1 %v6407_v22 }
 0xadc   : > { %429 = vxpose.xlu1.b32.start.end [1/1] (short) (narrow) %v10078_v1, 32  ;;  %v6442_v1 = vld [vmem:[%s10963_s5 + $0x28] sm:$0xff] }
 0xadd   : > { %v6452_v41 = vand.u32 4294901760, %v6442_v1 }
 0xadf   : > { %v10631_v39 = vpack.c.bf16 %v6452_v41, %v6449_v35  ;;  %v10635_v44 = vsub.f32 %v6442_v1, %v6452_v41  ;;  %v6940_v41 = vand.u32 4294901760, %v6438_v34 }
 0xae1   : > { %9413 = vmatpush3.bf16.msra.mxu0 %v10631_v39  ;;  %v6537_v51 = vand.u32 4294901760, %v10635_v44  ;;  %v9424_v2 = vpack.c.bf16 %v10635_v44, %v10633_v40  ;;  %v7024_v40 = vsub.f32 %v6438_v34, %v6940_v41  ;;  %v7430_v34 = vld [vmem:[%s10964_s6 + $0x58] sm:$0xff] }
 0xae2   : > { %9414 = vmatprep.subr.bf16.mxu0 %v9881_v25 }
 0xae3   : > { %v6538_v54 = vsub.f32 %v10635_v44, %v6537_v51  ;;  %v9436_v7 = vpack.c.bf16 %v6537_v51, %v6530_v50  ;;  %v6943_v44 = vand.u32 4294901760, %v6439_v36  ;;  %v7038_v51 = vsub.f32 %v6440_v38, %v6946_v47 }
 0xae5   : > { %9416 = vmatpush3.bf16.msra.mxu0 %v10642_v48  ;;  %v6539_v56 = vand.u32 4294901760, %v6538_v54  ;;  %v7031_v50 = vsub.f32 %v6439_v36, %v6943_v44  ;;  %v7025_v54 = vand.u32 4294901760, %v7024_v40  ;;  %v9451_v37 = vpack.c.bf16 %v6946_v47, %v6943_v44 }
 0xae6   : > { %9417 = vmatprep.subr.bf16.mxu0 %v9881_v25 }
 0xae7   : > { %v9418_v61 = vpack.c.bf16 %v6539_v56, %v6532_v32  ;;  %v7026_v58 = vsub.f32 %v7024_v40, %v7025_v54 }
 0xae9   : > { %v7027_v3 = vand.u32 4294901760, %v7026_v58 }
 0xafa   : > { %9746 = vset.pattern.permute.xlu1 %v9890_v21 }
 0xb36   : > { %v6409_v23 = vpop.xlane.xlu1 %6408 }
 0xb37   : > { %v6410_v26 = vmul.f32 0.03125, %v6409_v23 }
 0xb39   : > { %v6411_v17 = vsub.f32 %v10610_v20, %v6410_v26 }
 0xb3b   : > { %v6412_v55 = vmul.f32 %v6411_v17, %v6411_v17 }
 0xb3d   : > { %v6413_v45 = vsel %vm473_vm0, %v6412_v55, 0.0 }
 0xb3e   : > { %6414 = vadd.xlane.f32.xlu0 %v6413_v45 }
 0xb5c   : > { %v10617_v49 = vpop.trf.xlu1 }
 0xb60   : > { %v446_v15 = vpop.trf.xlu1 }
 0xb61   : > { %v462_v28 = vmul.f32 8.0, %v446_v15 }
 0xb63   : > { %v467_v27 = vmul.f32 1.442695, %v462_v28 }
 0xb64   : > { %v10668_v6 = vpop.trf.xlu1 }
 0xb65   : > { %9767 = vpow2.f32 %v467_v27 }
 0xb6f   : > { %v9768_v59 = vpop.eup %9767 }
 0xb70   : > { %2926 = vperm.xlu1 %9746, %v9768_v59   ;;  %v7032_v59 = vand.u32 4294901760, %v7031_v50 }
 0xb72   : > { %v7033_v19 = vsub.f32 %v7031_v50, %v7032_v59 }
 0xbcb   : > { %v6415_v9 = vpop.xlane.xlu0 %6414 }
 0xbcc   : > { %v6416_v10 = vmul.f32 0.03125, %v6415_v9 }
 0xbce   : > { %v6417_v24 = vadd.f32 1e-05, %v6416_v10 }
 0xbd0   : > { %9769 = vrsqrt.f32 %v6417_v24  ;;  %v9463_v24 = vpack.c.bf16 %v7038_v51, %v7031_v50 }
 0xbda   : > { %v9770_v46 = vpop.eup %9769 }
 0xbdb   : > { %v6419_v11 = vmul.f32 %v9770_v46, %v6411_v17  ;;  %v10676_v17 = vpop.trf.xlu1 }
 0xbdd   : > { %v6424_v13 = vmul.f32 %v8198_v52, %v6419_v11  ;;  %v7423_v11 = vld [vmem:[%s10964_s6 + $0x20] sm:$0xff] }
 0xbdf   : > { %v6429_v16 = vadd.f32 %v8199_v12, %v6424_v13  ;;  %v7424_v12 = vld [vmem:[%s10964_s6 + $0x28] sm:$0xff]  ;;  %v7436_v13 = vand.u32 4294901760, %v7423_v11 }
 0xbe1   : > { %7991 = vst.msk [vmem:[%s10104_s28 - $0x6] sm:$0x80] %vm7989_vm2, %v6429_v16  ;;  %v6431_v63 = vrot.slane %v6429_v16, 7  ;;  %s8178_s28 = sshll.u32 %s10679_s25, 5  ;;  %v6934_v27 = vsel %vm473_vm0, %v6429_v16, 0  ;;  %v7439_v16 = vand.u32 4294901760, %v7424_v12 }
 0xbe2   : > { %s10687_s14 = scalar_lea.vmem [#allocation4], %s8178_s28  ;;  %v10720_v31 = vand.u32 4294901760, %v6934_v27 }
 0xbe3   : > { %v6436_v22 = vsel %vm402_vm3, %v8200_v18, %v6431_v63  ;;  %v10763_v18 = vpack.c.bf16 %v7439_v16, %v7436_v13  ;;  %v7425_v63 = vld [vmem:[%s10964_s6 + $0x30] sm:$0xff]  ;;  %s8031_s16 = sshll.u32 %s10687_s14, 4  ;;  %s10879_s16 = int_to_ptr.vmem [resolvable:$true] %s8031_s16 }
 0xbe4   : > { %v6446_v21 = vsel %vm473_vm0, %v6436_v22, 0  ;;  %v7006_v32 = vsub.f32 %v6934_v27, %v10720_v31  ;;  %v7426_v22 = vld [vmem:[%s10964_s6 + $0x38] sm:$0xff]  ;;  %s9785_s21 = scalar_lea.vmem %s10879_s16, 512 }
 0xbe5   : > { %v10673_v23 = vand.u32 4294901760, %v6446_v21  ;;  %9485 = vmatpush3.bf16.msra.mxu1 %v10763_v18  ;;  %p9786_p11 = scmp.ne.s32.totalorder %s10879_s16, %s9785_s21 }
 0xbe6   : > { %9486 = vmatprep.subr.bf16.mxu1 %v9881_v25 }
 0xbe7   : > { %v6518_v26 = vsub.f32 %v6446_v21, %v10673_v23  ;;  %v7442_v21 = vand.u32 4294901760, %v7425_v63  ;;  %p9787_p12 = pnand %p9786_p11, %p9983_p5 }
 0xbe9   : > { %v6519_v55 = vand.u32 4294901760, %v6518_v26  ;;  %v10799_v27 = vsub.f32 %v7425_v63, %v7442_v21  ;;  %p9788_p13 = pneg %p9787_p12 }
 0xbeb   : > { %v6520_v45 = vsub.f32 %v6518_v26, %v6519_v55  ;;  %v7535_v50 = vand.u32 4294901760, %v10799_v27 }
 0xbed   : > { %v6521_v15 = vand.u32 4294901760, %v6520_v45  ;;  %v7428_v45 = vld [vmem:[%s10964_s6 + $0x48] sm:$0xff] }
 0xbef   : > { %9030 = vmatmul.mubr.f32.vlgmr.msra.gmra.mrb[18].mxu0 %v6521_v15  ;;  %v2927_v28 = vpop.permute.xlu1 %2926 }
 0xbf0   : > { %v2930_v62 = vmul.f32 %v9781_v29, %v2927_v28  ;;  %9419 = vmatpush3.bf16.msra.mxu0 %v9418_v61  ;;  %9040 = vmatprep.mubr.msk.f32.mxu0 %vm9882_vm1, %v9883_v30  ;;  %v7039_v61 = vand.u32 4294901760, %v7038_v51  ;;  %v7451_v28 = vand.u32 4294901760, %v7428_v45  ;;  %v10783_v29 = vsub.f32 %v7423_v11, %v7436_v13 }
 0xbf1   : > { %9420 = vmatprep.subr.bf16.mxu0 %v9881_v25 }
 0xbf2   : > { %v3468_v1 = vadd.f32 %v10486_v60, %v2930_v62  ;;  %v6437_v60 = vld [vmem:[%s10963_s5] sm:$0xff]  ;;  %v9475_v52 = vpack.c.bf16 %v7039_v61, %v7032_v59  ;;  %v10785_v62 = vsub.f32 %v7424_v12, %v7439_v16  ;;  %v7521_v36 = vand.u32 4294901760, %v10783_v29 }
 0xbf3   : > { %v6937_v35 = vand.u32 4294901760, %v6437_v60  ;;  %v7536_v59 = vsub.f32 %v10799_v27, %v7535_v50 }
 0xbf4   : > { %3470 = vst.msk [vmem:[%s10687_s14 + $0x8] sm:$0xff] %vm1530_vm4, %v3468_v1  ;;  %9422 = vmatpush3.bf16.msra.mxu0 %v9421_v4  ;;  %v7040_v4 = vsub.f32 %v7038_v51, %v7039_v61  ;;  %v7528_v38 = vand.u32 4294901760, %v10785_v62  ;;  %v7522_v44 = vsub.f32 %v10783_v29, %v7521_v36  ;;  %v9508_v12 = vpack.c.bf16 %v10785_v62, %v10783_v29 }
 0xbf5   : > { %9423 = vmatprep.subr.bf16.mxu0 %v9881_v25  ;;  %v7017_v14 = vsub.f32 %v6437_v60, %v6937_v35  ;;  %v9448_v56 = vpack.c.bf16 %v6940_v41, %v6937_v35  ;;  %v7429_v60 = vld [vmem:[%s10964_s6 + $0x50] sm:$0xff]  ;;  %v7457_v41 = vand.u32 4294901760, %v7430_v34 }
 0xbf6   : > { %v7454_v35 = vand.u32 4294901760, %v7429_v60  ;;  %v7529_v47 = vsub.f32 %v10785_v62, %v7528_v38 }
 0xbf7   : > { %9041 = vmatmul.mubr.f32.vlgmr.msra.gmra.mrb[18].mxu0 %v10673_v23  ;;  %v7018_v53 = vand.u32 4294901760, %v7017_v14  ;;  %v9460_v10 = vpack.c.bf16 %v7024_v40, %v7017_v14 }
 0xbf8   : > { %9425 = vmatpush3.bf16.msra.mxu0 %v9424_v2  ;;  %9051 = vmatprep.mubr.msk.f32.mxu0 %vm9882_vm1, %v9883_v30  ;;  %v10803_v40 = vpack.c.bf16 %v7457_v41, %v7454_v35 }
 0xbf9   : > { %9426 = vmatprep.subr.bf16.mxu0 %v9881_v25  ;;  %v7019_v57 = vsub.f32 %v7017_v14, %v7018_v53  ;;  %v9472_v46 = vpack.c.bf16 %v7025_v54, %v7018_v53  ;;  %v7530_v53 = vand.u32 4294901760, %v7529_v47 }
 0xbfb   : > { %v7020_v0 = vand.u32 4294901760, %v7019_v57  ;;  %v7569_v57 = vsub.f32 %v7430_v34, %v7457_v41 }
 0xbfc   : > { %9428 = vmatpush3.bf16.msra.mxu0 %v9427_v5  ;;  %v7034_v5 = vand.u32 4294901760, %v7033_v19 }
 0xbfd   : > { %9429 = vmatprep.subr.bf16.mxu0 %v9881_v25  ;;  %v9454_v2 = vpack.c.bf16 %v7027_v3, %v7020_v0  ;;  %v7537_v0 = vand.u32 4294901760, %v7536_v59 }
 0xbff   : > { %9052 = vmatmul.mubr.f32.vlgmr.msra.gmra.mrb[18].mxu0 %v6518_v26 }
 0xc00   : > { %9431 = vmatpush3.bf16.msra.mxu0 %v10631_v39  ;;  %9062 = vmatprep.mubr.msk.f32.mxu0 %vm9882_vm1, %v9883_v30 }
 0xc01   : > { %9432 = vmatprep.subr.bf16.mxu0 %v9881_v25 }
 0xc04   : > { %9434 = vmatpush3.bf16.msra.mxu0 %v10642_v48 }
 0xc05   : > { %9435 = vmatprep.subr.bf16.mxu0 %v9881_v25 }
 0xc07   : > { %9063 = vmatmul.mubr.f32.vlgmr.msra.gmra.mrb[18].mxu0 %v6519_v55  ;;  %v7427_v55 = vld [vmem:[%s10964_s6 + $0x40] sm:$0xff] }
 0xc08   : > { %9437 = vmatpush3.bf16.msra.mxu0 %v9436_v7  ;;  %9073 = vmatprep.mubr.msk.f32.mxu0 %vm9882_vm1, %v9883_v30  ;;  %v7041_v7 = vand.u32 4294901760, %v7040_v4  ;;  %v7448_v15 = vand.u32 4294901760, %v7427_v55 }
 0xc09   : > { %9438 = vmatprep.subr.bf16.mxu0 %v9881_v25 }
 0xc0a   : > { %v9457_v9 = vpack.c.bf16 %v7041_v7, %v7034_v5  ;;  %v10787_v1 = vpack.c.bf16 %v7451_v28, %v7448_v15  ;;  %v7548_v54 = vsub.f32 %v7427_v55, %v7448_v15 }
 0xc0c   : > { %9440 = vmatpush3.bf16.msra.mxu0 %v9439_v8 }
 0xc0d   : > { %9441 = vmatprep.subr.bf16.mxu0 %v9881_v25 }
 0xc0f   : > { %9074 = vmatmul.mubr.f32.vlgmr.msra.gmra.mrb[18].mxu0 %v10673_v23 }
 0xc10   : > { %9443 = vmatpush3.bf16.msra.mxu0 %v10631_v39  ;;  %9084 = vmatprep.mubr.msk.f32.mxu0 %vm9882_vm1, %v9883_v30  ;;  %v7007_v39 = vand.u32 4294901760, %v7006_v32 }
 0xc11   : > { %9444 = vmatprep.subr.bf16.mxu0 %v9881_v25 }
 0xc14   : > { %9446 = vmatpush3.bf16.msra.mxu0 %v10642_v48  ;;  %v7008_v48 = vsub.f32 %v7006_v32, %v7007_v39 }
 0xc15   : > { %9447 = vmatprep.subr.bf16.mxu0 %v9881_v25 }
 0xc16   : > { %v7009_v8 = vand.u32 4294901760, %v7008_v48 }
 0xc17   : > { %9085 = vmatmul.mubr.f32.vlgmr.msra.gmra.mrb[18].mxu0 %v10673_v23  ;;  %v7445_v23 = vand.u32 4294901760, %v7426_v22 }
 0xc18   : > { %9449 = vmatpush3.bf16.msra.mxu0 %v9448_v56  ;;  %9095 = vmatprep.mubr.msk.f32.mxu0 %vm9882_vm1, %v9883_v30 }
 0xc19   : > { %9450 = vmatprep.subr.bf16.mxu0 %v9881_v25  ;;  %v10773_v26 = vpack.c.bf16 %v7445_v23, %v7442_v21  ;;  %v10801_v14 = vsub.f32 %v7426_v22, %v7445_v23  ;;  %v9532_v22 = vpack.c.bf16 %v7528_v38, %v7521_v36  ;;  %v461_v36 = vmul.f32 8.0, %v10617_v49 }
 0xc1b   : > { %9488 = vmatpush3.bf16.msra.mxu1 %v10773_v26  ;;  %v7542_v51 = vand.u32 4294901760, %v10801_v14  ;;  %v9511_v13 = vpack.c.bf16 %v10801_v14, %v10799_v27  ;;  %v465_v38 = vmul.f32 1.442695, %v461_v36  ;;  %v464_v27 = vmul.f32 8.0, %v10676_v17 }
 0xc1c   : > { %9452 = vmatpush3.bf16.msra.mxu0 %v9451_v37  ;;  %9489 = vmatprep.subr.bf16.mxu1 %v9881_v25 }
 0xc1d   : > { %9453 = vmatprep.subr.bf16.mxu0 %v9881_v25  ;;  %v7543_v61 = vsub.f32 %v10801_v14, %v7542_v51  ;;  %v9535_v21 = vpack.c.bf16 %v7542_v51, %v7535_v50  ;;  %9771 = vpow2.f32 %v465_v38 }
 0xc1f   : > { %9096 = vmatmul.mubr.f32.vlgmr.msra.gmra.mrb[18].mxu0 %v7009_v8  ;;  %9491 = vmatpush3.bf16.msra.mxu1 %v10787_v1  ;;  %v7544_v3 = vand.u32 4294901760, %v7543_v61  ;;  %v7570_v8 = vand.u32 4294901760, %v7569_v57 }
 0xc20   : > { %9455 = vmatpush3.bf16.msra.mxu0 %v9454_v2  ;;  %9106 = vmatprep.mubr.msk.f32.mxu0 %vm9882_vm1, %v9883_v30 }
 0xc21   : > { %9456 = vmatprep.subr.bf16.mxu0 %v9881_v25  ;;  %9492 = vmatprep.subr.bf16.mxu1 %v9881_v25  ;;  %v9499_v48 = vpack.c.bf16 %v7544_v3, %v7537_v0 }
 0xc23   : > { %9494 = vmatpush3.bf16.msra.mxu1 %v10803_v40 }
 0xc24   : > { %9458 = vmatpush3.bf16.msra.mxu0 %v9457_v9  ;;  %9495 = vmatprep.subr.bf16.mxu1 %v9881_v25 }
 0xc25   : > { %9459 = vmatprep.subr.bf16.mxu0 %v9881_v25 }
 0xc27   : > { %9107 = vmatmul.mubr.f32.vlgmr.msra.gmra.mrb[18].mxu0 %v10720_v31 }
 0xc28   : > { %9461 = vmatpush3.bf16.msra.mxu0 %v9460_v10  ;;  %9117 = vmatprep.mubr.msk.f32.mxu0 %vm9882_vm1, %v9883_v30 }
 0xc29   : > { %9462 = vmatprep.subr.bf16.mxu0 %v9881_v25 }
 0xc2c   : > { %9464 = vmatpush3.bf16.msra.mxu0 %v9463_v24  ;;  %v7571_v24 = vsub.f32 %v7569_v57, %v7570_v8 }
 0xc2d   : > { %9465 = vmatprep.subr.bf16.mxu0 %v9881_v25 }
 0xc2f   : > { %9118 = vmatmul.mubr.f32.vlgmr.msra.gmra.mrb[18].mxu0 %v7006_v32  ;;  %v7555_v32 = vsub.f32 %v7428_v45, %v7451_v28 }
 0xc30   : > { %9467 = vmatpush3.bf16.msra.mxu0 %v9448_v56  ;;  %9128 = vmatprep.mubr.msk.f32.mxu0 %vm9882_vm1, %v9883_v30 }
 0xc31   : > { %9468 = vmatprep.subr.bf16.mxu0 %v9881_v25  ;;  %v9514_v16 = vpack.c.bf16 %v7555_v32, %v7548_v54 }
 0xc34   : > { %9470 = vmatpush3.bf16.msra.mxu0 %v9451_v37 }
 0xc35   : > { %9471 = vmatprep.subr.bf16.mxu0 %v9881_v25 }
 0xc37   : > { %9129 = vmatmul.mubr.f32.vlgmr.msra.gmra.mrb[18].mxu0 %v7007_v39  ;;  %v7549_v39 = vand.u32 4294901760, %v7548_v54 }
 0xc38   : > { %9473 = vmatpush3.bf16.msra.mxu0 %v9472_v46  ;;  %9139 = vmatprep.mubr.msk.f32.mxu0 %vm9882_vm1, %v9883_v30 }
 0xc39   : > { %9474 = vmatprep.subr.bf16.mxu0 %v9881_v25  ;;  %v7550_v19 = vsub.f32 %v7548_v54, %v7549_v39  ;;  %v9782_v54 = vld [vmem:[%s10270_s23] sm:$0xff] }
 0xc3b   : > { %v7551_v2 = vand.u32 4294901760, %v7550_v19 }
 0xc3c   : > { %9476 = vmatpush3.bf16.msra.mxu0 %v9475_v52  ;;  %v7572_v52 = vand.u32 4294901760, %v7571_v24 }
 0xc3d   : > { %9477 = vmatprep.subr.bf16.mxu0 %v9881_v25 }
 0xc3f   : > { %9140 = vmatmul.mubr.f32.vlgmr.msra.gmra.mrb[18].mxu0 %v10720_v31 }
 0xc40   : > { %9479 = vmatpush3.bf16.msra.mxu0 %v9448_v56  ;;  %9150 = vmatprep.mubr.msk.f32.mxu0 %vm9882_vm1, %v9883_v30  ;;  %v7562_v56 = vsub.f32 %v7429_v60, %v7454_v35 }
 0xc41   : > { %9480 = vmatprep.subr.bf16.mxu0 %v9881_v25 }
 0xc42   : > { %v7563_v7 = vand.u32 4294901760, %v7562_v56  ;;  %v9517_v63 = vpack.c.bf16 %v7569_v57, %v7562_v56 }
 0xc44   : > { %9482 = vmatpush3.bf16.msra.mxu0 %v9451_v37  ;;  %v7556_v37 = vand.u32 4294901760, %v7555_v32  ;;  %v7564_v10 = vsub.f32 %v7562_v56, %v7563_v7  ;;  %v9541_v55 = vpack.c.bf16 %v7570_v8, %v7563_v7 }
 0xc46   : > { %v7557_v4 = vsub.f32 %v7555_v32, %v7556_v37  ;;  %v7565_v46 = vand.u32 4294901760, %v7564_v10  ;;  %v9538_v23 = vpack.c.bf16 %v7556_v37, %v7549_v39  ;;  %v9784_v37 = vld [vmem:[%s10270_s23 + $0x18] sm:$0xff] }
 0xc47   : > { %9151 = vmatmul.mubr.f32.vlgmr.msra.gmra.mrb[18].mxu0 %v10720_v31  ;;  %v7523_v31 = vand.u32 4294901760, %v7522_v44 }
 0xc48   : > { %v7558_v5 = vand.u32 4294901760, %v7557_v4  ;;  %v9505_v11 = vpack.c.bf16 %v7572_v52, %v7565_v46 }
 0xc49   : > { %v9496_v58 = vpack.c.bf16 %v7530_v53, %v7523_v31 }
 0xc4a   : > { %v9502_v9 = vpack.c.bf16 %v7558_v5, %v7551_v2 }
 0xd1a   : > { %v10817_v45 = vpop.f32.mrb[18].mxu0 }
 0xd1b   : > { %v7421_v15 = vmax.f32 %v10817_v45, 0.0  ;;  %v9152_v28 = vpop.f32.mrb[19].mxu0 }
 0xd1d   : > { %v7422_v60 = vmul.f32 %v7421_v15, %v7421_v15 }
 0xd1f   : > { %v7433_v34 = vsel %vm7431_vm7, %v7422_v60, 0 }
 0xd20   : > { %v7508_v35 = vand.u32 4294901760, %v7433_v34 }
 0xd22   : > { %v7509_v41 = vsub.f32 %v7433_v34, %v7508_v35 }
 0xd24   : > { %v7510_v29 = vand.u32 4294901760, %v7509_v41 }
 0xd26   : > { %v7511_v62 = vsub.f32 %v7509_v41, %v7510_v29 }
 0xd28   : > { %v7512_v44 = vand.u32 4294901760, %v7511_v62 }
 0xd2a   : > { %9170 = vmatmul.mubr.f32.vlgmr.msra.gmra.mrb[24].mxu1 %v7512_v44 }
 0xd2b   : > { %9497 = vmatpush3.bf16.msra.mxu1 %v9496_v58  ;;  %9188 = vmatprep.mubr.msk.f32.mxu1 %vm9882_vm1, %v9883_v30  ;;  %v9783_v58 = vld [vmem:[%s10270_s23 + $0x10] sm:$0xff]  ;;  %s9891_s23 = smov [#allocation4]  }
 0xd2c   : > { %9498 = vmatprep.subr.bf16.mxu1 %v9881_v25  ;;  %s9789_s24 = sshll.u32 %s9891_s23, 4  ;;  %s9790_s24 = int_to_ptr.vmem [resolvable:$false] %s9789_s24 }
 0xd2d   : > { %s9791_s28 = scalar_lea.vmem %s9790_s24, 1024  ;;  %p9792_p0 = scmp.lt.s32.totalorder %s10879_s16, %s9790_s24 }
 0xd2e   : > { %p9793_p1 = scmp.lt.s32.totalorder %s9791_s28, %s9785_s21 }
 0xd2f   : > { %9500 = vmatpush3.bf16.msra.mxu1 %v9499_v48 }
 0xd30   : > { %9501 = vmatprep.subr.bf16.mxu1 %v9881_v25  ;;  %p9794_p2 = por %p9793_p1, %p9792_p0 }
 0xd32   : > { %p9795_p3 = pnand %p9794_p2, %p9788_p13 }
 0xd33   : > { %9503 = vmatpush3.bf16.msra.mxu1 %v9502_v9 }
 0xd34   : > { %9504 = vmatprep.subr.bf16.mxu1 %v9881_v25 }
 0xd37   : > { %9506 = vmatpush3.bf16.msra.mxu1 %v9505_v11 }
 0xd38   : > { %9507 = vmatprep.subr.bf16.mxu1 %v9881_v25 }
 0xd3a   : > { %9189 = vmatmul.mubr.f32.vlgmr.msra.gmra.mrb[24].mxu1 %v7508_v35 }
 0xd3b   : > { %9509 = vmatpush3.bf16.msra.mxu1 %v9508_v12  ;;  %9207 = vmatprep.mubr.msk.f32.mxu1 %vm9882_vm1, %v9883_v30 }
 0xd3c   : > { %9510 = vmatprep.subr.bf16.mxu1 %v9881_v25 }
 0xd3f   : > { %9512 = vmatpush3.bf16.msra.mxu1 %v9511_v13 }
 0xd40   : > { %9513 = vmatprep.subr.bf16.mxu1 %v9881_v25 }
 0xd43   : > { %9515 = vmatpush3.bf16.msra.mxu1 %v9514_v16 }
 0xd44   : > { %9516 = vmatprep.subr.bf16.mxu1 %v9881_v25 }
 0xd47   : > { %9518 = vmatpush3.bf16.msra.mxu1 %v9517_v63 }
 0xd48   : > { %9519 = vmatprep.subr.bf16.mxu1 %v9881_v25 }
 0xd4a   : > { %9208 = vmatmul.mubr.f32.vlgmr.msra.gmra.mrb[24].mxu1 %v7509_v41 }
 0xd4b   : > { %9521 = vmatpush3.bf16.msra.mxu1 %v10763_v18  ;;  %9226 = vmatprep.mubr.msk.f32.mxu1 %vm9882_vm1, %v9883_v30 }
 0xd4c   : > { %9522 = vmatprep.subr.bf16.mxu1 %v9881_v25 }
 0xd4f   : > { %9524 = vmatpush3.bf16.msra.mxu1 %v10773_v26 }
 0xd50   : > { %9525 = vmatprep.subr.bf16.mxu1 %v9881_v25 }
 0xd53   : > { %9527 = vmatpush3.bf16.msra.mxu1 %v10787_v1 }
 0xd54   : > { %9528 = vmatprep.subr.bf16.mxu1 %v9881_v25 }
 0xd57   : > { %9530 = vmatpush3.bf16.msra.mxu1 %v10803_v40 }
 0xd58   : > { %9531 = vmatprep.subr.bf16.mxu1 %v9881_v25 }
 0xd5a   : > { %9227 = vmatmul.mubr.f32.vlgmr.msra.gmra.mrb[24].mxu1 %v7510_v29 }
 0xd5b   : > { %9533 = vmatpush3.bf16.msra.mxu1 %v9532_v22  ;;  %9245 = vmatprep.mubr.msk.f32.mxu1 %vm9882_vm1, %v9883_v30 }
 0xd5c   : > { %9534 = vmatprep.subr.bf16.mxu1 %v9881_v25 }
 0xd5f   : > { %9536 = vmatpush3.bf16.msra.mxu1 %v9535_v21 }
 0xd60   : > { %9537 = vmatprep.subr.bf16.mxu1 %v9881_v25 }
 0xd63   : > { %9539 = vmatpush3.bf16.msra.mxu1 %v9538_v23 }
 0xd64   : > { %9540 = vmatprep.subr.bf16.mxu1 %v9881_v25 }
 0xd67   : > { %9542 = vmatpush3.bf16.msra.mxu1 %v9541_v55 }
 0xd68   : > { %9543 = vmatprep.subr.bf16.mxu1 %v9881_v25 }
 0xd6a   : > { %9246 = vmatmul.mubr.f32.vlgmr.msra.gmra.mrb[24].mxu1 %v7508_v35 }
 0xd6b   : > { %9545 = vmatpush3.bf16.msra.mxu1 %v10763_v18  ;;  %9264 = vmatprep.mubr.msk.f32.mxu1 %vm9882_vm1, %v9883_v30  ;;  %v463_v18 = vmul.f32 8.0, %v10668_v6  ;;  %v8201_v6 = vmul.f32 -1.442695, %v10817_v45 }
 0xd6c   : > { %9546 = vmatprep.subr.bf16.mxu1 %v9881_v25 }
 0xd6d   : > { %v469_v30 = vmul.f32 1.442695, %v463_v18 }
 0xd6f   : > { %9548 = vmatpush3.bf16.msra.mxu1 %v10773_v26  ;;  %9773 = vpow2.f32 %v469_v30  ;;  %v471_v26 = vmul.f32 1.442695, %v464_v27 }
 0xd70   : > { %9549 = vmatprep.subr.bf16.mxu1 %v9881_v25 }
 0xd71   : > { %9775 = vpow2.f32 %v471_v26 }
 0xd72   : > { %9777 = vpow2.f32 %v8201_v6 }
 0xd73   : > { %9551 = vmatpush3.bf16.msra.mxu1 %v10787_v1 }
 0xd74   : > { %9552 = vmatprep.subr.bf16.mxu1 %v9881_v25  ;;  %v9772_v25 = vpop.eup %9771 }
 0xd77   : > { %9554 = vmatpush3.bf16.msra.mxu1 %v10803_v40 }
 0xd79   : > { %v9774_v40 = vpop.eup %9773 }
 0xd7a   : > { %9265 = vmatmul.mubr.f32.vlgmr.msra.gmra.mrb[24].mxu1 %v7508_v35 }
 0xd7b   : > { %v9776_v49 = vpop.eup %9775 }
 0xd7c   : > { %v9778_v17 = vpop.eup %9777 }
 0xd7d   : > { %v7975_v47 = vadd.f32 1.0, %v9778_v17 }
 0xd7f   : > { %9779 = vrcp.f32 %v7975_v47 }
 0xd89   : > { %v9780_v31 = vpop.eup %9779 }
 0xe4d   : > { %v7968_v14 = vpop.f32.mrb[24].mxu1 }
 0xe4e   : > { %7979 = vrot.lane.b32.xlu0 %v7968_v14, %s9885_s29  ;;  %v9266_v1 = vpop.f32.mrb[25].mxu1 }
 0xe52   : > { %2921 = vperm.xlu0 %9745, %v9772_v25  }
 0xe56   : > { %4907 = vperm.xlu0 %9745, %v9774_v40  }
 0xe5a   : > { %4912 = vperm.xlu0 %9745, %v9776_v49  }
 0xec0   : > { %v7980_v50 = vpop.permute.xlu0 %7979 }
 0xec1   : > { %v7982_v51 = vmul.f32 %v9780_v31, %v7980_v50 }
 0xec3   : > { %7984 = vrot.lane.b32.xlu0 %v7982_v51, %s9885_s29 }
 0xed1   : > { %v2922_v53 = vpop.permute.xlu0 %2921 }
 0xed2   : > { %v2929_v32 = vmul.f32 %v9782_v54, %v2922_v53 }
 0xed4   : > { %v3467_v56 = vadd.f32 %v10488_v33, %v2929_v32 }
 0xed5   : > { %v4908_v57 = vpop.permute.xlu0 %4907 }
 0xed6   : > { %3469 = vst.msk [vmem:[%s10687_s14] sm:$0xff] %vm1530_vm4, %v3467_v56  ;;  %v4915_v59 = vmul.f32 %v9783_v58, %v4908_v57 }
 0xed8   : > { %v5447_v61 = vadd.f32 %v10607_v43, %v4915_v59 }
 0xed9   : > { %v4913_v39 = vpop.permute.xlu0 %4912 }
 0xeda   : > { %8196 = vst.msk [vmem:[%s10687_s14 + $0x10] sm:$0xff] %vm1530_vm4, %v5447_v61  ;;  %v4916_v0 = vmul.f32 %v9784_v37, %v4913_v39 }
 0xedc   : > { %v5448_v33 = vadd.f32 %v10605_v42, %v4916_v0 }
 0xede   : > { %8197 = vst.msk [vmem:[%s10687_s14 + $0x18] sm:$0xff] %vm1530_vm4, %v5448_v33 }
 0xedf   : > { %9798 = shalt.err (!%p9795_p3)
}
 0xee0   : > { %s9799_s14 = scalar_lea.hbm %s10877_s27, 512  ;;  %s9803_s26 = scalar_lea.hbm %s10967_s9, 1024 }
 0xee1   : > { %p9800_p4 = scmp.ne.s32.totalorder %s10877_s27, %s9799_s14  ;;  %p9804_p9 = scmp.lt.u32.totalorder %s10877_s27, %s10967_s9 }
 0xee2   : > { %p9805_p10 = scmp.lt.u32.totalorder %s9803_s26, %s9799_s14  ;;  %p9807_p12 = scmp.lt.u32.totalorder %s9799_s14, %s10877_s27 }
 0xee3   : > { %p9801_p7 = pnand %p9800_p4, %p9983_p5 }
 0xee4   : > { %p9806_p11 = por %p9805_p10, %p9804_p9 }
 0xee5   : > { %p9802_p8 = pneg %p9801_p7 }
 0xee6   : > { %p9808_p13 = por %p9807_p12, %p9806_p11 }
 0xee8   : > { %p9809_p0 = pnand %p9808_p13, %p9802_p8 }
 0xeea   : > { %9812 = shalt.err (!%p9809_p0)
}
 0xeeb   : > { %s9892_s21 = smov 128   ;;  %s9893_s28 = smov 8  }
 0xeec   : > { %9690 = dma.vmem_to_hbm [thread:$0]  (%p9983_p5), %s10879_s16, 512, %s10877_s27, %s8002_s17, %s9892_s21, %s9892_s21, %s9893_s28  }
 0xeed   : > { %s8177_s22 = sshll.u32 %s10679_s25, 3  ;;  %s8204_s29 = sshll.u32 %s9966_s13, 7 }
 0xeee   : > { %s355_s26 = scalar_lea.vmem [#allocation2], %s8177_s22  ;;  %s10914_s0 = scalar_lea.hbm %s10965_s7, %s8204_s29 }
 0xeef   : > { %s8015_s14 = sshll.u32 %s355_s26, 4  ;;  %s7993_s16 = scalar_lea.sflag [#allocation3], %s10679_s25  ;;  %s10916_s14 = int_to_ptr.vmem [resolvable:$true] %s8015_s14 }
 0xef0   : > { %s9813_s27 = scalar_lea.vmem %s10916_s14, 128  ;;  %s9894_s13 = smov [#allocation2]  }
 0xef1   : > { %p9814_p1 = scmp.ne.s32.totalorder %s10916_s14, %s9813_s27  ;;  %s9817_s17 = sshll.u32 %s9894_s13, 4  ;;  %s9818_s17 = int_to_ptr.vmem [resolvable:$false] %s9817_s17 }
 0xef2   : > { %s9819_s21 = scalar_lea.vmem %s9818_s17, 256  ;;  %p9820_p4 = scmp.lt.s32.totalorder %s10916_s14, %s9818_s17 }
 0xef3   : > { %p9815_p2 = pnand %p9814_p1, %p9983_p5  ;;  %p9821_p7 = scmp.lt.s32.totalorder %s9819_s21, %s9813_s27 }
 0xef5   : > { %p9816_p3 = pneg %p9815_p2  ;;  %p9822_p8 = por %p9821_p7, %p9820_p4 }
 0xef7   : > { %p9823_p9 = pnand %p9822_p8, %p9816_p3 }
 0xf35   : > { %v7985_v42 = vpop.permute.xlu0 %7984 }
 0xf36   : > { %v7987_v43 = vadd.f32 %v7985_v42, %v10610_v20 }
 0xf38   : > { %7988 = vst.msk [vmem:[%s355_s26] sm:$0xff] %vm473_vm0, %v7987_v43 }
 0xf39   : > { %9826 = shalt.err (!%p9823_p9)
}
 0xf3a   : > { %s9827_s25 = scalar_lea.hbm %s10914_s0, 128  ;;  %s9831_s29 = scalar_lea.hbm %s10965_s7, 256 }
 0xf3b   : > { %p9828_p10 = scmp.ne.s32.totalorder %s10914_s0, %s9827_s25  ;;  %p9832_p13 = scmp.lt.u32.totalorder %s10914_s0, %s10965_s7 }
 0xf3c   : > { %p9833_p0 = scmp.lt.u32.totalorder %s9831_s29, %s9827_s25  ;;  %p9835_p2 = scmp.lt.u32.totalorder %s9827_s25, %s10914_s0 }
 0xf3d   : > { %p9829_p11 = pnand %p9828_p10, %p9983_p5 }
 0xf3e   : > { %p9834_p1 = por %p9833_p0, %p9832_p13 }
 0xf3f   : > { %p9830_p12 = pneg %p9829_p11 }
 0xf40   : > { %p9836_p3 = por %p9835_p2, %p9834_p1 }
 0xf42   : > { %p9837_p4 = pnand %p9836_p3, %p9830_p12 }
 0xf44   : > { %9840 = shalt.err (!%p9837_p4)
}
 0xf45   : > { %9689 = dma.vmem_to_hbm [thread:$0]  (%p9983_p5), %s10916_s14, 128, %s10914_s0, %s7993_s16  }
 0xf46 PF: > { %p9700_p7 = scmp.ge.s32.totalorder %s9879_s12, 2  ;;  %s8046_s24 = sand.u32 1, %s9867_s30  }
 0xf47   : > { %s8047_s27 = scalar_lea.sflag [#allocation3], %s8046_s24 }
 0xf48   : > { %p9694_p8 = pnand %p9700_p7, %p9987_p6 }
 0xf4a   : > { %9858 = dma.done.wait (!%p9694_p8), %s8047_s27, 128  }
 0xf4b   : > { %9860 = vsyncadd (!%p9694_p8), %s8047_s27, 4294967168  ;;  %s8063_s13 = scalar_lea.sflag [#allocation5], %s8046_s24 }
 0xf4c   : > { %9862 = dma.done.wait (!%p9694_p8), %s8063_s13, 512  }
 0xf4d   : > { %9864 = vsyncadd (!%p9694_p8), %s8063_s13, 4294966784  ;;  %p23_p5 = scmp.ge.s32.totalorder %s9970_s15, 4   ;;  %s10972_s30 = smov %s9871_s10 }
 0xf4e   : > { %s10973_s10 = smov %s9875_s11  ;;  %s10974_s11 = smov %s9981_s18 }
 0xf4f   : > { %s10975_s12 = smov %s9970_s15  ;;  %25 = sbr.rel (!%p23_p5) target bundleno = 7 (0x7), region = 120 }
 0xf56   :  { %8068 = vsyncpa [#allocation3], 1 }
 0xf57   :  { %8070 = vsyncpa [#allocation3 + $0x1], 1 }
 0xf58   :  { %8071 = vsyncpa [#allocation5], 1 }
 0xf59   :  { %8073 = vsyncpa [#allocation5 + $0x1], 1 }

</bundles_post_ra>
